<compile_context>
chip_gen: v7x
topology: tpu7x:2x2x1
jax: 0.10.0
libtpu: 0.0.40
codegen_flags: <defaults>
</compile_context>

<pallas_src>
import math

import jax
import jax.numpy as jnp
from jax.experimental import pallas as pl
from jax.experimental.pallas import tpu as pltpu

# Model hyper-parameters (mirroring the PyTorch script's StudentModel defaults).
CSI_INPUT_DIM = 50      # seq2seq input_size
HIDDEN_DIM = 10         # GRU hidden size
EMBEDDING_DIM = 7       # seq2seq output_size == DecoderDv embedding_dim
OUTPUT_DIM = 28         # DecoderDv output_dim
NEG_SLOPE = 0.01        # nn.LeakyReLU default

# ---- single packed parameter slab: (144, 128) f32, row offsets 8-aligned ----
SLAB_ROWS, SLAB_COLS = 144, 128
A_COLS = 56             # input padded from 50 -> 56 lanes (8-aligned K for the encoder dot)

ENC_WI_R = 0            # rows 0:56   encoder  W_ih^T (gates r|z|n on lanes 0:30), rows 50:56 zero
DEC_WI_R = 56           # rows 56:66  decoder  W_ih^T
DEC_WH_R = 72           # rows 72:82  decoder  W_hh^T
OUT_W_R = 88            # rows 88:98  decoder  out Linear(10,7) weight^T
DS_W1_R = 104           # rows 104:112 DecoderDv Linear(7,14) weight^T (row 7 zero pad)
DS_W2_R = 112           # rows 112:128 DecoderDv Linear(14,28) weight^T (rows 14:16 zero pad)

ENC_BI_ROW = 128        # encoder b_ih with b_hh[r,z] folded in (lanes 0:30)
ENC_BHN_ROW = 129       # encoder b_hh n-gate only (lanes 0:10)
DEC_BI_ROW = 130        # decoder b_ih (lanes 0:30)
DEC_BH_ROW = 131        # decoder b_hh (lanes 0:30)
INTO_W_ROW = 132        # "into" Linear(1,10) weight column (lanes 0:10)
INTO_B_ROW = 133        # "into" bias (lanes 0:10)
OUT_B_ROW = 134         # out bias (lanes 0:7)
DS_B1_ROW = 135         # DecoderDv L1 bias (lanes 0:14)
DS_B2_ROW = 136         # DecoderDv L2 bias (lanes 0:28)


def student_kernel(a_ref, p_ref, o_ref):
    f32 = jnp.float32
    H = HIDDEN_DIM

    def sigmoid(x):
        # exact sigmoid via tanh: one EUP op + one fma (no f32 divide)
        return 0.5 * (jnp.tanh(0.5 * x) + 1.0)

    def leaky(x):
        return jnp.maximum(x, NEG_SLOPE * x)

    # ---- hoisted parameter loads (whole slab arrives via a single BlockSpec DMA) ----
    enc_wi = p_ref[ENC_WI_R:ENC_WI_R + A_COLS, :]                    # (56,128)
    dec_wi = p_ref[DEC_WI_R:DEC_WI_R + H, :]                         # (10,128)
    dec_wh = p_ref[DEC_WH_R:DEC_WH_R + H, :]                         # (10,128)
    out_w = p_ref[OUT_W_R:OUT_W_R + H, :][:, 0:EMBEDDING_DIM]        # (10,7)
    ds_w1 = p_ref[DS_W1_R:DS_W1_R + 8, :][:, 0:16]                   # (8,16), row 7 zero
    ds_w2 = p_ref[DS_W2_R:DS_W2_R + 16, :]                           # (16,128)

    enc_bi = p_ref[ENC_BI_ROW:ENC_BI_ROW + 1, :]                     # (1,128), b_hh[r,z] folded in
    enc_bhn = p_ref[ENC_BHN_ROW:ENC_BHN_ROW + 1, :][:, 0:H]          # (1,10)
    dec_bi = p_ref[DEC_BI_ROW:DEC_BI_ROW + 1, :]                     # (1,128)
    dec_bh = p_ref[DEC_BH_ROW:DEC_BH_ROW + 1, :]                     # (1,128)
    into_w = p_ref[INTO_W_ROW:INTO_W_ROW + 1, :][:, 0:H]             # (1,10)
    into_b = p_ref[INTO_B_ROW:INTO_B_ROW + 1, :][:, 0:H]             # (1,10)
    out_b = p_ref[OUT_B_ROW:OUT_B_ROW + 1, :][:, 0:EMBEDDING_DIM]    # (1,7)
    ds_b1 = p_ref[DS_B1_ROW:DS_B1_ROW + 1, :][:, 0:16]               # (1,16)
    ds_b2 = p_ref[DS_B2_ROW:DS_B2_ROW + 1, :]                        # (1,128)

    # ---- seqEncoder: one GRU step over the length-1 sequence, specialized h0 == 0 ----
    a = a_ref[...]                                                   # (B,56), lanes 50:56 zero
    gi = jnp.dot(a, enc_wi, preferred_element_type=f32) + enc_bi     # (B,128)
    rz = sigmoid(gi[:, 0:2 * H])                                     # one EUP push for r and z
    r, z = rz[:, 0:H], rz[:, H:2 * H]
    n = jnp.tanh(gi[:, 2 * H:3 * H] + r * enc_bhn)
    h = (1.0 - z) * n                                                # + z*h0 == 0

    # ---- seqDecoder: 7 greedy steps (serial chain), fused gate matmuls ----
    # TODO(synk): PyTorch feeds torch.empty (uninitialized memory) as the first decoder
    # input; we deterministically use 0.0 instead.
    dec_in = h[:, 0:1] * 0.0                                         # (B,1), no captured consts
    h1_pre = None                                                    # DecoderDv L1 pre-activation

    for di in range(EMBEDDING_DIM):
        x = leaky(dec_in * into_w + into_b)                          # Linear(1,H): (B,10)
        gi = jnp.dot(x, dec_wi, preferred_element_type=f32) + dec_bi # (B,128)
        gh = jnp.dot(h, dec_wh, preferred_element_type=f32) + dec_bh # (B,128), off critical path
        rz = sigmoid(gi[:, 0:2 * H] + gh[:, 0:2 * H])
        r, z = rz[:, 0:H], rz[:, H:2 * H]
        n = jnp.tanh(gi[:, 2 * H:3 * H] + r * gh[:, 2 * H:3 * H])
        h = (1.0 - z) * n + z * h

        logits = jnp.dot(h, out_w, preferred_element_type=f32) + out_b   # (B,7)
        # topv = max(log_softmax(logits)) = -log(sum(exp(logits - max)))
        m = jnp.max(logits, axis=-1, keepdims=True)
        topv = -jnp.log(jnp.sum(jnp.exp(logits - m), axis=-1, keepdims=True))  # (B,1)

        contrib = topv * ds_w1[di:di + 1, :]                         # (B,16) = topv x L1 row di
        h1_pre = contrib if h1_pre is None else h1_pre + contrib
        dec_in = topv                                                # fed back as next input

    # ---- DecoderDv: Linear(7,14) -> LeakyReLU -> Linear(14,28) -> Sigmoid ----
    h1 = leaky(h1_pre + ds_b1)                                       # (B,16), lanes 14:16 zero
    o_ref[...] = sigmoid(jnp.dot(h1, ds_w2, preferred_element_type=f32) + ds_b2)  # (B,128)


# ----------------------------- parameter setup ------------------------------

def _uniform(key, shape, bound):
    return jax.random.uniform(key, shape, jnp.float32, -bound, bound)


def init_linear(key, in_dim, out_dim):
    """PyTorch nn.Linear layout: weight (out, in), bias (out,)."""
    k1, k2 = jax.random.split(key)
    bound = 1.0 / math.sqrt(in_dim)
    return _uniform(k1, (out_dim, in_dim), bound), _uniform(k2, (out_dim,), bound)


def init_gru(key, in_dim, hid):
    """PyTorch nn.GRU layout: W_ih (3H,in), W_hh (3H,H), b_ih (3H,), b_hh (3H,), gates r|z|n."""
    k1, k2, k3, k4 = jax.random.split(key, 4)
    bound = 1.0 / math.sqrt(hid)
    return (_uniform(k1, (3 * hid, in_dim), bound),
            _uniform(k2, (3 * hid, hid), bound),
            _uniform(k3, (3 * hid,), bound),
            _uniform(k4, (3 * hid,), bound))


def make_params(key):
    keys = jax.random.split(key, 6)
    return dict(
        enc=init_gru(keys[0], CSI_INPUT_DIM, HIDDEN_DIM),
        into=init_linear(keys[1], 1, HIDDEN_DIM),
        dec=init_gru(keys[2], HIDDEN_DIM, HIDDEN_DIM),
        out=init_linear(keys[3], HIDDEN_DIM, EMBEDDING_DIM),
        ds1=init_linear(keys[4], EMBEDDING_DIM, 14),
        ds2=init_linear(keys[5], 14, OUTPUT_DIM),
    )


def pack_params(params):
    """Pack everything into a single (144,128) f32 slab (weights + biases)."""
    f32 = jnp.float32
    H = HIDDEN_DIM
    G = 3 * H
    enc_wih, _enc_whh, enc_bih, enc_bhh = params["enc"]   # encoder W_hh unused (h0 == 0)
    into_w, into_b = params["into"]
    dec_wih, dec_whh, dec_bih, dec_bhh = params["dec"]
    out_w, out_b = params["out"]
    ds_w1, ds_b1 = params["ds1"]
    ds_w2, ds_b2 = params["ds2"]

    P = jnp.zeros((SLAB_ROWS, SLAB_COLS), f32)
    P = P.at[ENC_WI_R:ENC_WI_R + CSI_INPUT_DIM, 0:G].set(enc_wih.T)   # (50,30), rows 50:56 zero
    P = P.at[DEC_WI_R:DEC_WI_R + H, 0:G].set(dec_wih.T)               # (10,30)
    P = P.at[DEC_WH_R:DEC_WH_R + H, 0:G].set(dec_whh.T)               # (10,30)
    P = P.at[OUT_W_R:OUT_W_R + H, 0:EMBEDDING_DIM].set(out_w.T)       # (10,7)
    P = P.at[DS_W1_R:DS_W1_R + EMBEDDING_DIM, 0:14].set(ds_w1.T)      # (7,14), row 7 zero
    P = P.at[DS_W2_R:DS_W2_R + 14, 0:OUTPUT_DIM].set(ds_w2.T)         # (14,28), rows 14:16 zero

    # Fold encoder b_hh (r,z gates) into b_ih; keep only the n-gate b_hh separately.
    enc_bi_folded = enc_bih.at[0:2 * H].add(enc_bhh[0:2 * H])
    P = P.at[ENC_BI_ROW, 0:G].set(enc_bi_folded)
    P = P.at[ENC_BHN_ROW, 0:H].set(enc_bhh[2 * H:3 * H])
    P = P.at[DEC_BI_ROW, 0:G].set(dec_bih)
    P = P.at[DEC_BH_ROW, 0:G].set(dec_bhh)
    P = P.at[INTO_W_ROW, 0:H].set(into_w[:, 0])
    P = P.at[INTO_B_ROW, 0:H].set(into_b)
    P = P.at[OUT_B_ROW, 0:EMBEDDING_DIM].set(out_b)
    P = P.at[DS_B1_ROW, 0:14].set(ds_b1)
    P = P.at[DS_B2_ROW, 0:OUTPUT_DIM].set(ds_b2)
    return P


# ------------------------------- wrappers -------------------------------------

def _batch_tiling(B):
    """Pad batch to a sublane-friendly size and pick a batch tile."""
    if B <= 128:
        b_pad = max(8, ((B + 7) // 8) * 8)
        tb = b_pad
    else:
        tb = 128
        b_pad = ((B + tb - 1) // tb) * tb
    return b_pad, tb


def student_model_batched(A, slab):
    """A: (B, 50) batch of independent CSI vectors; each row follows the original
    single-sample StudentModel.forward semantics. Returns (B, 28)."""
    A = jnp.asarray(A, jnp.float32).reshape(-1, CSI_INPUT_DIM)
    B = A.shape[0]
    b_pad, tb = _batch_tiling(B)

    # Pad batch (sublanes) and input features 50 -> 56 lanes (zero K rows are free on the MXU).
    A_pad = jnp.zeros((b_pad, A_COLS), jnp.float32).at[:B, :CSI_INPUT_DIM].set(A)

    out = pl.pallas_call(
        student_kernel,
        out_shape=jax.ShapeDtypeStruct((b_pad, 128), jnp.float32),
        grid_spec=pltpu.PrefetchScalarGridSpec(
            num_scalar_prefetch=0,
            grid=(b_pad // tb,),
            in_specs=[
                pl.BlockSpec((tb, A_COLS), lambda i: (i, 0)),            # activations stream
                pl.BlockSpec((SLAB_ROWS, SLAB_COLS), lambda i: (0, 0)),  # params VMEM-resident
            ],
            out_specs=pl.BlockSpec((tb, 128), lambda i: (i, 0)),         # lane-dense store
        ),
        compiler_params=pltpu.CompilerParams(
            dimension_semantics=("parallel",)),                          # 2-TC sharding on v7x
    )(A_pad, slab)
    return out[:B, :OUTPUT_DIM]


def student_model(a, slab):
    """a: 1-D array with CSI_INPUT_DIM elements (mirrors `a.reshape((1,1,50))`)."""
    a2 = jnp.asarray(a, jnp.float32).reshape(1, CSI_INPUT_DIM)
    return student_model_batched(a2, slab)[0]


if __name__ == "__main__":
    key = jax.random.PRNGKey(0)
    k_in, k_par = jax.random.split(key)

    params = make_params(k_par)
    slab = pack_params(params)

    # Small batch of independent samples (each row == one StudentModel.forward call).
    A = jax.random.normal(k_in, (8, CSI_INPUT_DIM), jnp.float32)
    S = jax.block_until_ready(student_model_batched(A, slab))
    assert S.shape == (8, OUTPUT_DIM)
    assert bool(jnp.all(jnp.isfinite(S)))
    assert bool(jnp.all((S >= 0.0) & (S <= 1.0)))   # sigmoid output range

    # Single-sample path (matches the original forward signature) agrees with the batch.
    s0 = jax.block_until_ready(student_model(A[0], slab))
    assert s0.shape == (OUTPUT_DIM,)
    assert bool(jnp.allclose(s0, S[0], atol=1e-5))

    print("KERNEL_OK")
</pallas_src>

<mosaic_0001>
module attributes {stable_mosaic.version = 11 : i64} {
  func.func @student_kernel(%arg0: i32, %arg1: memref<8x56xf32, #tpu.memory_space<vmem>>, %arg2: memref<144x128xf32, #tpu.memory_space<vmem>>, %arg3: memref<8x128xf32, #tpu.memory_space<vmem>>) attributes {dimension_semantics = [#tpu.dimension_semantics<parallel>], iteration_bounds = array<i64: 1>, scalar_prefetch = 0 : i64, scratch_operands = 0 : i64, tpu.core_type = #tpu.core_type<tc>, window_params = [{transform_indices = @transform_0, window_bounds = array<i64: 8, 56>}, {pipeline_mode = #tpu.pipeline_mode<synchronous>, transform_indices = @transform_1, window_bounds = array<i64: 144, 128>}, {transform_indices = @transform_2, window_bounds = array<i64: 8, 128>}]} {
    %c0 = arith.constant 0 : index
    %c0_0 = arith.constant 0 : index
    %0 = vector.load %arg2[%c0, %c0_0] : memref<144x128xf32, #tpu.memory_space<vmem>>, vector<56x128xf32>
    %c56 = arith.constant 56 : index
    %c0_1 = arith.constant 0 : index
    %1 = vector.load %arg2[%c56, %c0_1] : memref<144x128xf32, #tpu.memory_space<vmem>>, vector<10x128xf32>
    %c72 = arith.constant 72 : index
    %c0_2 = arith.constant 0 : index
    %2 = vector.load %arg2[%c72, %c0_2] : memref<144x128xf32, #tpu.memory_space<vmem>>, vector<10x128xf32>
    %c88 = arith.constant 88 : index
    %c0_3 = arith.constant 0 : index
    %3 = vector.load %arg2[%c88, %c0_3] : memref<144x128xf32, #tpu.memory_space<vmem>>, vector<10x128xf32>
    %4 = vector.extract_strided_slice %3 {offsets = [0, 0], sizes = [10, 7], strides = [1, 1]} : vector<10x128xf32> to vector<10x7xf32>
    %c104 = arith.constant 104 : index
    %c0_4 = arith.constant 0 : index
    %5 = vector.load %arg2[%c104, %c0_4] : memref<144x128xf32, #tpu.memory_space<vmem>>, vector<8x128xf32>
    %6 = vector.extract_strided_slice %5 {offsets = [0, 0], sizes = [8, 16], strides = [1, 1]} : vector<8x128xf32> to vector<8x16xf32>
    %c112 = arith.constant 112 : index
    %c0_5 = arith.constant 0 : index
    %7 = vector.load %arg2[%c112, %c0_5] : memref<144x128xf32, #tpu.memory_space<vmem>>, vector<16x128xf32>
    %c128 = arith.constant 128 : index
    %c0_6 = arith.constant 0 : index
    %8 = vector.load %arg2[%c128, %c0_6] : memref<144x128xf32, #tpu.memory_space<vmem>>, vector<1x128xf32>
    %c129 = arith.constant 129 : index
    %c0_7 = arith.constant 0 : index
    %9 = vector.load %arg2[%c129, %c0_7] : memref<144x128xf32, #tpu.memory_space<vmem>>, vector<1x128xf32>
    %10 = vector.extract_strided_slice %9 {offsets = [0, 0], sizes = [1, 10], strides = [1, 1]} : vector<1x128xf32> to vector<1x10xf32>
    %c130 = arith.constant 130 : index
    %c0_8 = arith.constant 0 : index
    %11 = vector.load %arg2[%c130, %c0_8] : memref<144x128xf32, #tpu.memory_space<vmem>>, vector<1x128xf32>
    %c131 = arith.constant 131 : index
    %c0_9 = arith.constant 0 : index
    %12 = vector.load %arg2[%c131, %c0_9] : memref<144x128xf32, #tpu.memory_space<vmem>>, vector<1x128xf32>
    %c132 = arith.constant 132 : index
    %c0_10 = arith.constant 0 : index
    %13 = vector.load %arg2[%c132, %c0_10] : memref<144x128xf32, #tpu.memory_space<vmem>>, vector<1x128xf32>
    %14 = vector.extract_strided_slice %13 {offsets = [0, 0], sizes = [1, 10], strides = [1, 1]} : vector<1x128xf32> to vector<1x10xf32>
    %c133 = arith.constant 133 : index
    %c0_11 = arith.constant 0 : index
    %15 = vector.load %arg2[%c133, %c0_11] : memref<144x128xf32, #tpu.memory_space<vmem>>, vector<1x128xf32>
    %16 = vector.extract_strided_slice %15 {offsets = [0, 0], sizes = [1, 10], strides = [1, 1]} : vector<1x128xf32> to vector<1x10xf32>
    %c134 = arith.constant 134 : index
    %c0_12 = arith.constant 0 : index
    %17 = vector.load %arg2[%c134, %c0_12] : memref<144x128xf32, #tpu.memory_space<vmem>>, vector<1x128xf32>
    %18 = vector.extract_strided_slice %17 {offsets = [0, 0], sizes = [1, 7], strides = [1, 1]} : vector<1x128xf32> to vector<1x7xf32>
    %c135 = arith.constant 135 : index
    %c0_13 = arith.constant 0 : index
    %19 = vector.load %arg2[%c135, %c0_13] : memref<144x128xf32, #tpu.memory_space<vmem>>, vector<1x128xf32>
    %20 = vector.extract_strided_slice %19 {offsets = [0, 0], sizes = [1, 16], strides = [1, 1]} : vector<1x128xf32> to vector<1x16xf32>
    %c136 = arith.constant 136 : index
    %c0_14 = arith.constant 0 : index
    %21 = vector.load %arg2[%c136, %c0_14] : memref<144x128xf32, #tpu.memory_space<vmem>>, vector<1x128xf32>
    %c0_15 = arith.constant 0 : index
    %c0_16 = arith.constant 0 : index
    %22 = vector.load %arg1[%c0_15, %c0_16] : memref<8x56xf32, #tpu.memory_space<vmem>>, vector<8x56xf32>
    %cst = arith.constant dense<0.000000e+00> : vector<8x128xf32>
    %23 = tpu.matmul %22, %0, %cst {dimension_numbers = #tpu.dot_dimension_numbers<[1], [0], [0], [1], [0, 0, 1, 1], [], []>} : vector<8x56xf32>, vector<56x128xf32>, vector<8x128xf32> -> vector<8x128xf32>
    %24 = vector.broadcast %8 : vector<1x128xf32> to vector<8x128xf32>
    %25 = arith.addf %23, %24 : vector<8x128xf32>
    %26 = vector.extract_strided_slice %25 {offsets = [0, 0], sizes = [8, 20], strides = [1, 1]} : vector<8x128xf32> to vector<8x20xf32>
    %cst_17 = arith.constant 5.000000e-01 : f32
    %27 = vector.broadcast %cst_17 : f32 to vector<8x20xf32>
    %28 = arith.mulf %27, %26 : vector<8x20xf32>
    %29 = math.tanh %28 : vector<8x20xf32>
    %cst_18 = arith.constant 1.000000e+00 : f32
    %30 = vector.broadcast %cst_18 : f32 to vector<8x20xf32>
    %31 = arith.addf %29, %30 : vector<8x20xf32>
    %cst_19 = arith.constant 5.000000e-01 : f32
    %32 = vector.broadcast %cst_19 : f32 to vector<8x20xf32>
    %33 = arith.mulf %32, %31 : vector<8x20xf32>
    %34 = vector.extract_strided_slice %33 {offsets = [0, 0], sizes = [8, 10], strides = [1, 1]} : vector<8x20xf32> to vector<8x10xf32>
    %35 = vector.extract_strided_slice %33 {offsets = [0, 10], sizes = [8, 10], strides = [1, 1]} : vector<8x20xf32> to vector<8x10xf32>
    %36 = vector.extract_strided_slice %25 {offsets = [0, 20], sizes = [8, 10], strides = [1, 1]} : vector<8x128xf32> to vector<8x10xf32>
    %37 = vector.broadcast %10 : vector<1x10xf32> to vector<8x10xf32>
    %38 = arith.mulf %34, %37 : vector<8x10xf32>
    %39 = arith.addf %36, %38 : vector<8x10xf32>
    %40 = math.tanh %39 : vector<8x10xf32>
    %cst_20 = arith.constant 1.000000e+00 : f32
    %41 = vector.broadcast %cst_20 : f32 to vector<8x10xf32>
    %42 = arith.subf %41, %35 : vector<8x10xf32>
    %43 = arith.mulf %42, %40 : vector<8x10xf32>
    %44 = vector.extract_strided_slice %43 {offsets = [0, 0], sizes = [8, 1], strides = [1, 1]} : vector<8x10xf32> to vector<8x1xf32>
    %cst_21 = arith.constant 0.000000e+00 : f32
    %45 = vector.broadcast %cst_21 : f32 to vector<8x1xf32>
    %46 = arith.mulf %44, %45 : vector<8x1xf32>
    %47 = vector.broadcast %46 : vector<8x1xf32> to vector<8x10xf32>
    %48 = vector.broadcast %14 : vector<1x10xf32> to vector<8x10xf32>
    %49 = arith.mulf %47, %48 : vector<8x10xf32>
    %50 = vector.broadcast %16 : vector<1x10xf32> to vector<8x10xf32>
    %51 = arith.addf %49, %50 : vector<8x10xf32>
    %cst_22 = arith.constant 0.00999999977 : f32
    %52 = vector.broadcast %cst_22 : f32 to vector<8x10xf32>
    %53 = arith.mulf %52, %51 : vector<8x10xf32>
    %54 = arith.maximumf %51, %53 : vector<8x10xf32>
    %cst_23 = arith.constant dense<0.000000e+00> : vector<8x128xf32>
    %55 = tpu.matmul %54, %1, %cst_23 {dimension_numbers = #tpu.dot_dimension_numbers<[1], [0], [0], [1], [0, 0, 1, 1], [], []>} : vector<8x10xf32>, vector<10x128xf32>, vector<8x128xf32> -> vector<8x128xf32>
    %56 = vector.broadcast %11 : vector<1x128xf32> to vector<8x128xf32>
    %57 = arith.addf %55, %56 : vector<8x128xf32>
    %cst_24 = arith.constant dense<0.000000e+00> : vector<8x128xf32>
    %58 = tpu.matmul %43, %2, %cst_24 {dimension_numbers = #tpu.dot_dimension_numbers<[1], [0], [0], [1], [0, 0, 1, 1], [], []>} : vector<8x10xf32>, vector<10x128xf32>, vector<8x128xf32> -> vector<8x128xf32>
    %59 = vector.broadcast %12 : vector<1x128xf32> to vector<8x128xf32>
    %60 = arith.addf %58, %59 : vector<8x128xf32>
    %61 = vector.extract_strided_slice %57 {offsets = [0, 0], sizes = [8, 20], strides = [1, 1]} : vector<8x128xf32> to vector<8x20xf32>
    %62 = vector.extract_strided_slice %60 {offsets = [0, 0], sizes = [8, 20], strides = [1, 1]} : vector<8x128xf32> to vector<8x20xf32>
    %63 = arith.addf %61, %62 : vector<8x20xf32>
    %cst_25 = arith.constant 5.000000e-01 : f32
    %64 = vector.broadcast %cst_25 : f32 to vector<8x20xf32>
    %65 = arith.mulf %64, %63 : vector<8x20xf32>
    %66 = math.tanh %65 : vector<8x20xf32>
    %cst_26 = arith.constant 1.000000e+00 : f32
    %67 = vector.broadcast %cst_26 : f32 to vector<8x20xf32>
    %68 = arith.addf %66, %67 : vector<8x20xf32>
    %cst_27 = arith.constant 5.000000e-01 : f32
    %69 = vector.broadcast %cst_27 : f32 to vector<8x20xf32>
    %70 = arith.mulf %69, %68 : vector<8x20xf32>
    %71 = vector.extract_strided_slice %70 {offsets = [0, 0], sizes = [8, 10], strides = [1, 1]} : vector<8x20xf32> to vector<8x10xf32>
    %72 = vector.extract_strided_slice %70 {offsets = [0, 10], sizes = [8, 10], strides = [1, 1]} : vector<8x20xf32> to vector<8x10xf32>
    %73 = vector.extract_strided_slice %57 {offsets = [0, 20], sizes = [8, 10], strides = [1, 1]} : vector<8x128xf32> to vector<8x10xf32>
    %74 = vector.extract_strided_slice %60 {offsets = [0, 20], sizes = [8, 10], strides = [1, 1]} : vector<8x128xf32> to vector<8x10xf32>
    %75 = arith.mulf %71, %74 : vector<8x10xf32>
    %76 = arith.addf %73, %75 : vector<8x10xf32>
    %77 = math.tanh %76 : vector<8x10xf32>
    %cst_28 = arith.constant 1.000000e+00 : f32
    %78 = vector.broadcast %cst_28 : f32 to vector<8x10xf32>
    %79 = arith.subf %78, %72 : vector<8x10xf32>
    %80 = arith.mulf %79, %77 : vector<8x10xf32>
    %81 = arith.mulf %72, %43 : vector<8x10xf32>
    %82 = arith.addf %80, %81 : vector<8x10xf32>
    %cst_29 = arith.constant dense<0.000000e+00> : vector<8x7xf32>
    %83 = tpu.matmul %82, %4, %cst_29 {dimension_numbers = #tpu.dot_dimension_numbers<[1], [0], [0], [1], [0, 0, 1, 1], [], []>} : vector<8x10xf32>, vector<10x7xf32>, vector<8x7xf32> -> vector<8x7xf32>
    %84 = vector.broadcast %18 : vector<1x7xf32> to vector<8x7xf32>
    %85 = arith.addf %83, %84 : vector<8x7xf32>
    %cst_30 = arith.constant dense<0xFF800000> : vector<8xf32>
    %86 = vector.multi_reduction <maximumf>, %85, %cst_30 [1] : vector<8x7xf32> to vector<8xf32>
    %87 = vector.shape_cast %86 : vector<8xf32> to vector<8x1xf32>
    %88 = vector.broadcast %87 : vector<8x1xf32> to vector<8x7xf32>
    %89 = arith.subf %85, %88 : vector<8x7xf32>
    %90 = math.exp %89 : vector<8x7xf32>
    %cst_31 = arith.constant dense<0.000000e+00> : vector<8xf32>
    %91 = vector.multi_reduction <add>, %90, %cst_31 [1] : vector<8x7xf32> to vector<8xf32>
    %92 = vector.shape_cast %91 : vector<8xf32> to vector<8x1xf32>
    %93 = math.log %92 : vector<8x1xf32>
    %cst_32 = arith.constant 0.000000e+00 : f32
    %94 = vector.broadcast %cst_32 : f32 to vector<8x1xf32>
    %95 = arith.subf %94, %93 : vector<8x1xf32>
    %96 = vector.extract_strided_slice %6 {offsets = [0, 0], sizes = [1, 16], strides = [1, 1]} : vector<8x16xf32> to vector<1x16xf32>
    %97 = vector.broadcast %95 : vector<8x1xf32> to vector<8x16xf32>
    %98 = vector.broadcast %96 : vector<1x16xf32> to vector<8x16xf32>
    %99 = arith.mulf %97, %98 : vector<8x16xf32>
    %100 = vector.broadcast %95 : vector<8x1xf32> to vector<8x10xf32>
    %101 = vector.broadcast %14 : vector<1x10xf32> to vector<8x10xf32>
    %102 = arith.mulf %100, %101 : vector<8x10xf32>
    %103 = vector.broadcast %16 : vector<1x10xf32> to vector<8x10xf32>
    %104 = arith.addf %102, %103 : vector<8x10xf32>
    %cst_33 = arith.constant 0.00999999977 : f32
    %105 = vector.broadcast %cst_33 : f32 to vector<8x10xf32>
    %106 = arith.mulf %105, %104 : vector<8x10xf32>
    %107 = arith.maximumf %104, %106 : vector<8x10xf32>
    %cst_34 = arith.constant dense<0.000000e+00> : vector<8x128xf32>
    %108 = tpu.matmul %107, %1, %cst_34 {dimension_numbers = #tpu.dot_dimension_numbers<[1], [0], [0], [1], [0, 0, 1, 1], [], []>} : vector<8x10xf32>, vector<10x128xf32>, vector<8x128xf32> -> vector<8x128xf32>
    %109 = vector.broadcast %11 : vector<1x128xf32> to vector<8x128xf32>
    %110 = arith.addf %108, %109 : vector<8x128xf32>
    %cst_35 = arith.constant dense<0.000000e+00> : vector<8x128xf32>
    %111 = tpu.matmul %82, %2, %cst_35 {dimension_numbers = #tpu.dot_dimension_numbers<[1], [0], [0], [1], [0, 0, 1, 1], [], []>} : vector<8x10xf32>, vector<10x128xf32>, vector<8x128xf32> -> vector<8x128xf32>
    %112 = vector.broadcast %12 : vector<1x128xf32> to vector<8x128xf32>
    %113 = arith.addf %111, %112 : vector<8x128xf32>
    %114 = vector.extract_strided_slice %110 {offsets = [0, 0], sizes = [8, 20], strides = [1, 1]} : vector<8x128xf32> to vector<8x20xf32>
    %115 = vector.extract_strided_slice %113 {offsets = [0, 0], sizes = [8, 20], strides = [1, 1]} : vector<8x128xf32> to vector<8x20xf32>
    %116 = arith.addf %114, %115 : vector<8x20xf32>
    %cst_36 = arith.constant 5.000000e-01 : f32
    %117 = vector.broadcast %cst_36 : f32 to vector<8x20xf32>
    %118 = arith.mulf %117, %116 : vector<8x20xf32>
    %119 = math.tanh %118 : vector<8x20xf32>
    %cst_37 = arith.constant 1.000000e+00 : f32
    %120 = vector.broadcast %cst_37 : f32 to vector<8x20xf32>
    %121 = arith.addf %119, %120 : vector<8x20xf32>
    %cst_38 = arith.constant 5.000000e-01 : f32
    %122 = vector.broadcast %cst_38 : f32 to vector<8x20xf32>
    %123 = arith.mulf %122, %121 : vector<8x20xf32>
    %124 = vector.extract_strided_slice %123 {offsets = [0, 0], sizes = [8, 10], strides = [1, 1]} : vector<8x20xf32> to vector<8x10xf32>
    %125 = vector.extract_strided_slice %123 {offsets = [0, 10], sizes = [8, 10], strides = [1, 1]} : vector<8x20xf32> to vector<8x10xf32>
    %126 = vector.extract_strided_slice %110 {offsets = [0, 20], sizes = [8, 10], strides = [1, 1]} : vector<8x128xf32> to vector<8x10xf32>
    %127 = vector.extract_strided_slice %113 {offsets = [0, 20], sizes = [8, 10], strides = [1, 1]} : vector<8x128xf32> to vector<8x10xf32>
    %128 = arith.mulf %124, %127 : vector<8x10xf32>
    %129 = arith.addf %126, %128 : vector<8x10xf32>
    %130 = math.tanh %129 : vector<8x10xf32>
    %cst_39 = arith.constant 1.000000e+00 : f32
    %131 = vector.broadcast %cst_39 : f32 to vector<8x10xf32>
    %132 = arith.subf %131, %125 : vector<8x10xf32>
    %133 = arith.mulf %132, %130 : vector<8x10xf32>
    %134 = arith.mulf %125, %82 : vector<8x10xf32>
    %135 = arith.addf %133, %134 : vector<8x10xf32>
    %cst_40 = arith.constant dense<0.000000e+00> : vector<8x7xf32>
    %136 = tpu.matmul %135, %4, %cst_40 {dimension_numbers = #tpu.dot_dimension_numbers<[1], [0], [0], [1], [0, 0, 1, 1], [], []>} : vector<8x10xf32>, vector<10x7xf32>, vector<8x7xf32> -> vector<8x7xf32>
    %137 = vector.broadcast %18 : vector<1x7xf32> to vector<8x7xf32>
    %138 = arith.addf %136, %137 : vector<8x7xf32>
    %cst_41 = arith.constant dense<0xFF800000> : vector<8xf32>
    %139 = vector.multi_reduction <maximumf>, %138, %cst_41 [1] : vector<8x7xf32> to vector<8xf32>
    %140 = vector.shape_cast %139 : vector<8xf32> to vector<8x1xf32>
    %141 = vector.broadcast %140 : vector<8x1xf32> to vector<8x7xf32>
    %142 = arith.subf %138, %141 : vector<8x7xf32>
    %143 = math.exp %142 : vector<8x7xf32>
    %cst_42 = arith.constant dense<0.000000e+00> : vector<8xf32>
    %144 = vector.multi_reduction <add>, %143, %cst_42 [1] : vector<8x7xf32> to vector<8xf32>
    %145 = vector.shape_cast %144 : vector<8xf32> to vector<8x1xf32>
    %146 = math.log %145 : vector<8x1xf32>
    %cst_43 = arith.constant 0.000000e+00 : f32
    %147 = vector.broadcast %cst_43 : f32 to vector<8x1xf32>
    %148 = arith.subf %147, %146 : vector<8x1xf32>
    %149 = vector.extract_strided_slice %6 {offsets = [1, 0], sizes = [1, 16], strides = [1, 1]} : vector<8x16xf32> to vector<1x16xf32>
    %150 = vector.broadcast %148 : vector<8x1xf32> to vector<8x16xf32>
    %151 = vector.broadcast %149 : vector<1x16xf32> to vector<8x16xf32>
    %152 = arith.mulf %150, %151 : vector<8x16xf32>
    %153 = arith.addf %99, %152 : vector<8x16xf32>
    %154 = vector.broadcast %148 : vector<8x1xf32> to vector<8x10xf32>
    %155 = vector.broadcast %14 : vector<1x10xf32> to vector<8x10xf32>
    %156 = arith.mulf %154, %155 : vector<8x10xf32>
    %157 = vector.broadcast %16 : vector<1x10xf32> to vector<8x10xf32>
    %158 = arith.addf %156, %157 : vector<8x10xf32>
    %cst_44 = arith.constant 0.00999999977 : f32
    %159 = vector.broadcast %cst_44 : f32 to vector<8x10xf32>
    %160 = arith.mulf %159, %158 : vector<8x10xf32>
    %161 = arith.maximumf %158, %160 : vector<8x10xf32>
    %cst_45 = arith.constant dense<0.000000e+00> : vector<8x128xf32>
    %162 = tpu.matmul %161, %1, %cst_45 {dimension_numbers = #tpu.dot_dimension_numbers<[1], [0], [0], [1], [0, 0, 1, 1], [], []>} : vector<8x10xf32>, vector<10x128xf32>, vector<8x128xf32> -> vector<8x128xf32>
    %163 = vector.broadcast %11 : vector<1x128xf32> to vector<8x128xf32>
    %164 = arith.addf %162, %163 : vector<8x128xf32>
    %cst_46 = arith.constant dense<0.000000e+00> : vector<8x128xf32>
    %165 = tpu.matmul %135, %2, %cst_46 {dimension_numbers = #tpu.dot_dimension_numbers<[1], [0], [0], [1], [0, 0, 1, 1], [], []>} : vector<8x10xf32>, vector<10x128xf32>, vector<8x128xf32> -> vector<8x128xf32>
    %166 = vector.broadcast %12 : vector<1x128xf32> to vector<8x128xf32>
    %167 = arith.addf %165, %166 : vector<8x128xf32>
    %168 = vector.extract_strided_slice %164 {offsets = [0, 0], sizes = [8, 20], strides = [1, 1]} : vector<8x128xf32> to vector<8x20xf32>
    %169 = vector.extract_strided_slice %167 {offsets = [0, 0], sizes = [8, 20], strides = [1, 1]} : vector<8x128xf32> to vector<8x20xf32>
    %170 = arith.addf %168, %169 : vector<8x20xf32>
    %cst_47 = arith.constant 5.000000e-01 : f32
    %171 = vector.broadcast %cst_47 : f32 to vector<8x20xf32>
    %172 = arith.mulf %171, %170 : vector<8x20xf32>
    %173 = math.tanh %172 : vector<8x20xf32>
    %cst_48 = arith.constant 1.000000e+00 : f32
    %174 = vector.broadcast %cst_48 : f32 to vector<8x20xf32>
    %175 = arith.addf %173, %174 : vector<8x20xf32>
    %cst_49 = arith.constant 5.000000e-01 : f32
    %176 = vector.broadcast %cst_49 : f32 to vector<8x20xf32>
    %177 = arith.mulf %176, %175 : vector<8x20xf32>
    %178 = vector.extract_strided_slice %177 {offsets = [0, 0], sizes = [8, 10], strides = [1, 1]} : vector<8x20xf32> to vector<8x10xf32>
    %179 = vector.extract_strided_slice %177 {offsets = [0, 10], sizes = [8, 10], strides = [1, 1]} : vector<8x20xf32> to vector<8x10xf32>
    %180 = vector.extract_strided_slice %164 {offsets = [0, 20], sizes = [8, 10], strides = [1, 1]} : vector<8x128xf32> to vector<8x10xf32>
    %181 = vector.extract_strided_slice %167 {offsets = [0, 20], sizes = [8, 10], strides = [1, 1]} : vector<8x128xf32> to vector<8x10xf32>
    %182 = arith.mulf %178, %181 : vector<8x10xf32>
    %183 = arith.addf %180, %182 : vector<8x10xf32>
    %184 = math.tanh %183 : vector<8x10xf32>
    %cst_50 = arith.constant 1.000000e+00 : f32
    %185 = vector.broadcast %cst_50 : f32 to vector<8x10xf32>
    %186 = arith.subf %185, %179 : vector<8x10xf32>
    %187 = arith.mulf %186, %184 : vector<8x10xf32>
    %188 = arith.mulf %179, %135 : vector<8x10xf32>
    %189 = arith.addf %187, %188 : vector<8x10xf32>
    %cst_51 = arith.constant dense<0.000000e+00> : vector<8x7xf32>
    %190 = tpu.matmul %189, %4, %cst_51 {dimension_numbers = #tpu.dot_dimension_numbers<[1], [0], [0], [1], [0, 0, 1, 1], [], []>} : vector<8x10xf32>, vector<10x7xf32>, vector<8x7xf32> -> vector<8x7xf32>
    %191 = vector.broadcast %18 : vector<1x7xf32> to vector<8x7xf32>
    %192 = arith.addf %190, %191 : vector<8x7xf32>
    %cst_52 = arith.constant dense<0xFF800000> : vector<8xf32>
    %193 = vector.multi_reduction <maximumf>, %192, %cst_52 [1] : vector<8x7xf32> to vector<8xf32>
    %194 = vector.shape_cast %193 : vector<8xf32> to vector<8x1xf32>
    %195 = vector.broadcast %194 : vector<8x1xf32> to vector<8x7xf32>
    %196 = arith.subf %192, %195 : vector<8x7xf32>
    %197 = math.exp %196 : vector<8x7xf32>
    %cst_53 = arith.constant dense<0.000000e+00> : vector<8xf32>
    %198 = vector.multi_reduction <add>, %197, %cst_53 [1] : vector<8x7xf32> to vector<8xf32>
    %199 = vector.shape_cast %198 : vector<8xf32> to vector<8x1xf32>
    %200 = math.log %199 : vector<8x1xf32>
    %cst_54 = arith.constant 0.000000e+00 : f32
    %201 = vector.broadcast %cst_54 : f32 to vector<8x1xf32>
    %202 = arith.subf %201, %200 : vector<8x1xf32>
    %203 = vector.extract_strided_slice %6 {offsets = [2, 0], sizes = [1, 16], strides = [1, 1]} : vector<8x16xf32> to vector<1x16xf32>
    %204 = vector.broadcast %202 : vector<8x1xf32> to vector<8x16xf32>
    %205 = vector.broadcast %203 : vector<1x16xf32> to vector<8x16xf32>
    %206 = arith.mulf %204, %205 : vector<8x16xf32>
    %207 = arith.addf %153, %206 : vector<8x16xf32>
    %208 = vector.broadcast %202 : vector<8x1xf32> to vector<8x10xf32>
    %209 = vector.broadcast %14 : vector<1x10xf32> to vector<8x10xf32>
    %210 = arith.mulf %208, %209 : vector<8x10xf32>
    %211 = vector.broadcast %16 : vector<1x10xf32> to vector<8x10xf32>
    %212 = arith.addf %210, %211 : vector<8x10xf32>
    %cst_55 = arith.constant 0.00999999977 : f32
    %213 = vector.broadcast %cst_55 : f32 to vector<8x10xf32>
    %214 = arith.mulf %213, %212 : vector<8x10xf32>
    %215 = arith.maximumf %212, %214 : vector<8x10xf32>
    %cst_56 = arith.constant dense<0.000000e+00> : vector<8x128xf32>
    %216 = tpu.matmul %215, %1, %cst_56 {dimension_numbers = #tpu.dot_dimension_numbers<[1], [0], [0], [1], [0, 0, 1, 1], [], []>} : vector<8x10xf32>, vector<10x128xf32>, vector<8x128xf32> -> vector<8x128xf32>
    %217 = vector.broadcast %11 : vector<1x128xf32> to vector<8x128xf32>
    %218 = arith.addf %216, %217 : vector<8x128xf32>
    %cst_57 = arith.constant dense<0.000000e+00> : vector<8x128xf32>
    %219 = tpu.matmul %189, %2, %cst_57 {dimension_numbers = #tpu.dot_dimension_numbers<[1], [0], [0], [1], [0, 0, 1, 1], [], []>} : vector<8x10xf32>, vector<10x128xf32>, vector<8x128xf32> -> vector<8x128xf32>
    %220 = vector.broadcast %12 : vector<1x128xf32> to vector<8x128xf32>
    %221 = arith.addf %219, %220 : vector<8x128xf32>
    %222 = vector.extract_strided_slice %218 {offsets = [0, 0], sizes = [8, 20], strides = [1, 1]} : vector<8x128xf32> to vector<8x20xf32>
    %223 = vector.extract_strided_slice %221 {offsets = [0, 0], sizes = [8, 20], strides = [1, 1]} : vector<8x128xf32> to vector<8x20xf32>
    %224 = arith.addf %222, %223 : vector<8x20xf32>
    %cst_58 = arith.constant 5.000000e-01 : f32
    %225 = vector.broadcast %cst_58 : f32 to vector<8x20xf32>
    %226 = arith.mulf %225, %224 : vector<8x20xf32>
    %227 = math.tanh %226 : vector<8x20xf32>
    %cst_59 = arith.constant 1.000000e+00 : f32
    %228 = vector.broadcast %cst_59 : f32 to vector<8x20xf32>
    %229 = arith.addf %227, %228 : vector<8x20xf32>
    %cst_60 = arith.constant 5.000000e-01 : f32
    %230 = vector.broadcast %cst_60 : f32 to vector<8x20xf32>
    %231 = arith.mulf %230, %229 : vector<8x20xf32>
    %232 = vector.extract_strided_slice %231 {offsets = [0, 0], sizes = [8, 10], strides = [1, 1]} : vector<8x20xf32> to vector<8x10xf32>
    %233 = vector.extract_strided_slice %231 {offsets = [0, 10], sizes = [8, 10], strides = [1, 1]} : vector<8x20xf32> to vector<8x10xf32>
    %234 = vector.extract_strided_slice %218 {offsets = [0, 20], sizes = [8, 10], strides = [1, 1]} : vector<8x128xf32> to vector<8x10xf32>
    %235 = vector.extract_strided_slice %221 {offsets = [0, 20], sizes = [8, 10], strides = [1, 1]} : vector<8x128xf32> to vector<8x10xf32>
    %236 = arith.mulf %232, %235 : vector<8x10xf32>
    %237 = arith.addf %234, %236 : vector<8x10xf32>
    %238 = math.tanh %237 : vector<8x10xf32>
    %cst_61 = arith.constant 1.000000e+00 : f32
    %239 = vector.broadcast %cst_61 : f32 to vector<8x10xf32>
    %240 = arith.subf %239, %233 : vector<8x10xf32>
    %241 = arith.mulf %240, %238 : vector<8x10xf32>
    %242 = arith.mulf %233, %189 : vector<8x10xf32>
    %243 = arith.addf %241, %242 : vector<8x10xf32>
    %cst_62 = arith.constant dense<0.000000e+00> : vector<8x7xf32>
    %244 = tpu.matmul %243, %4, %cst_62 {dimension_numbers = #tpu.dot_dimension_numbers<[1], [0], [0], [1], [0, 0, 1, 1], [], []>} : vector<8x10xf32>, vector<10x7xf32>, vector<8x7xf32> -> vector<8x7xf32>
    %245 = vector.broadcast %18 : vector<1x7xf32> to vector<8x7xf32>
    %246 = arith.addf %244, %245 : vector<8x7xf32>
    %cst_63 = arith.constant dense<0xFF800000> : vector<8xf32>
    %247 = vector.multi_reduction <maximumf>, %246, %cst_63 [1] : vector<8x7xf32> to vector<8xf32>
    %248 = vector.shape_cast %247 : vector<8xf32> to vector<8x1xf32>
    %249 = vector.broadcast %248 : vector<8x1xf32> to vector<8x7xf32>
    %250 = arith.subf %246, %249 : vector<8x7xf32>
    %251 = math.exp %250 : vector<8x7xf32>
    %cst_64 = arith.constant dense<0.000000e+00> : vector<8xf32>
    %252 = vector.multi_reduction <add>, %251, %cst_64 [1] : vector<8x7xf32> to vector<8xf32>
    %253 = vector.shape_cast %252 : vector<8xf32> to vector<8x1xf32>
    %254 = math.log %253 : vector<8x1xf32>
    %cst_65 = arith.constant 0.000000e+00 : f32
    %255 = vector.broadcast %cst_65 : f32 to vector<8x1xf32>
    %256 = arith.subf %255, %254 : vector<8x1xf32>
    %257 = vector.extract_strided_slice %6 {offsets = [3, 0], sizes = [1, 16], strides = [1, 1]} : vector<8x16xf32> to vector<1x16xf32>
    %258 = vector.broadcast %256 : vector<8x1xf32> to vector<8x16xf32>
    %259 = vector.broadcast %257 : vector<1x16xf32> to vector<8x16xf32>
    %260 = arith.mulf %258, %259 : vector<8x16xf32>
    %261 = arith.addf %207, %260 : vector<8x16xf32>
    %262 = vector.broadcast %256 : vector<8x1xf32> to vector<8x10xf32>
    %263 = vector.broadcast %14 : vector<1x10xf32> to vector<8x10xf32>
    %264 = arith.mulf %262, %263 : vector<8x10xf32>
    %265 = vector.broadcast %16 : vector<1x10xf32> to vector<8x10xf32>
    %266 = arith.addf %264, %265 : vector<8x10xf32>
    %cst_66 = arith.constant 0.00999999977 : f32
    %267 = vector.broadcast %cst_66 : f32 to vector<8x10xf32>
    %268 = arith.mulf %267, %266 : vector<8x10xf32>
    %269 = arith.maximumf %266, %268 : vector<8x10xf32>
    %cst_67 = arith.constant dense<0.000000e+00> : vector<8x128xf32>
    %270 = tpu.matmul %269, %1, %cst_67 {dimension_numbers = #tpu.dot_dimension_numbers<[1], [0], [0], [1], [0, 0, 1, 1], [], []>} : vector<8x10xf32>, vector<10x128xf32>, vector<8x128xf32> -> vector<8x128xf32>
    %271 = vector.broadcast %11 : vector<1x128xf32> to vector<8x128xf32>
    %272 = arith.addf %270, %271 : vector<8x128xf32>
    %cst_68 = arith.constant dense<0.000000e+00> : vector<8x128xf32>
    %273 = tpu.matmul %243, %2, %cst_68 {dimension_numbers = #tpu.dot_dimension_numbers<[1], [0], [0], [1], [0, 0, 1, 1], [], []>} : vector<8x10xf32>, vector<10x128xf32>, vector<8x128xf32> -> vector<8x128xf32>
    %274 = vector.broadcast %12 : vector<1x128xf32> to vector<8x128xf32>
    %275 = arith.addf %273, %274 : vector<8x128xf32>
    %276 = vector.extract_strided_slice %272 {offsets = [0, 0], sizes = [8, 20], strides = [1, 1]} : vector<8x128xf32> to vector<8x20xf32>
    %277 = vector.extract_strided_slice %275 {offsets = [0, 0], sizes = [8, 20], strides = [1, 1]} : vector<8x128xf32> to vector<8x20xf32>
    %278 = arith.addf %276, %277 : vector<8x20xf32>
    %cst_69 = arith.constant 5.000000e-01 : f32
    %279 = vector.broadcast %cst_69 : f32 to vector<8x20xf32>
    %280 = arith.mulf %279, %278 : vector<8x20xf32>
    %281 = math.tanh %280 : vector<8x20xf32>
    %cst_70 = arith.constant 1.000000e+00 : f32
    %282 = vector.broadcast %cst_70 : f32 to vector<8x20xf32>
    %283 = arith.addf %281, %282 : vector<8x20xf32>
    %cst_71 = arith.constant 5.000000e-01 : f32
    %284 = vector.broadcast %cst_71 : f32 to vector<8x20xf32>
    %285 = arith.mulf %284, %283 : vector<8x20xf32>
    %286 = vector.extract_strided_slice %285 {offsets = [0, 0], sizes = [8, 10], strides = [1, 1]} : vector<8x20xf32> to vector<8x10xf32>
    %287 = vector.extract_strided_slice %285 {offsets = [0, 10], sizes = [8, 10], strides = [1, 1]} : vector<8x20xf32> to vector<8x10xf32>
    %288 = vector.extract_strided_slice %272 {offsets = [0, 20], sizes = [8, 10], strides = [1, 1]} : vector<8x128xf32> to vector<8x10xf32>
    %289 = vector.extract_strided_slice %275 {offsets = [0, 20], sizes = [8, 10], strides = [1, 1]} : vector<8x128xf32> to vector<8x10xf32>
    %290 = arith.mulf %286, %289 : vector<8x10xf32>
    %291 = arith.addf %288, %290 : vector<8x10xf32>
    %292 = math.tanh %291 : vector<8x10xf32>
    %cst_72 = arith.constant 1.000000e+00 : f32
    %293 = vector.broadcast %cst_72 : f32 to vector<8x10xf32>
    %294 = arith.subf %293, %287 : vector<8x10xf32>
    %295 = arith.mulf %294, %292 : vector<8x10xf32>
    %296 = arith.mulf %287, %243 : vector<8x10xf32>
    %297 = arith.addf %295, %296 : vector<8x10xf32>
    %cst_73 = arith.constant dense<0.000000e+00> : vector<8x7xf32>
    %298 = tpu.matmul %297, %4, %cst_73 {dimension_numbers = #tpu.dot_dimension_numbers<[1], [0], [0], [1], [0, 0, 1, 1], [], []>} : vector<8x10xf32>, vector<10x7xf32>, vector<8x7xf32> -> vector<8x7xf32>
    %299 = vector.broadcast %18 : vector<1x7xf32> to vector<8x7xf32>
    %300 = arith.addf %298, %299 : vector<8x7xf32>
    %cst_74 = arith.constant dense<0xFF800000> : vector<8xf32>
    %301 = vector.multi_reduction <maximumf>, %300, %cst_74 [1] : vector<8x7xf32> to vector<8xf32>
    %302 = vector.shape_cast %301 : vector<8xf32> to vector<8x1xf32>
    %303 = vector.broadcast %302 : vector<8x1xf32> to vector<8x7xf32>
    %304 = arith.subf %300, %303 : vector<8x7xf32>
    %305 = math.exp %304 : vector<8x7xf32>
    %cst_75 = arith.constant dense<0.000000e+00> : vector<8xf32>
    %306 = vector.multi_reduction <add>, %305, %cst_75 [1] : vector<8x7xf32> to vector<8xf32>
    %307 = vector.shape_cast %306 : vector<8xf32> to vector<8x1xf32>
    %308 = math.log %307 : vector<8x1xf32>
    %cst_76 = arith.constant 0.000000e+00 : f32
    %309 = vector.broadcast %cst_76 : f32 to vector<8x1xf32>
    %310 = arith.subf %309, %308 : vector<8x1xf32>
    %311 = vector.extract_strided_slice %6 {offsets = [4, 0], sizes = [1, 16], strides = [1, 1]} : vector<8x16xf32> to vector<1x16xf32>
    %312 = vector.broadcast %310 : vector<8x1xf32> to vector<8x16xf32>
    %313 = vector.broadcast %311 : vector<1x16xf32> to vector<8x16xf32>
    %314 = arith.mulf %312, %313 : vector<8x16xf32>
    %315 = arith.addf %261, %314 : vector<8x16xf32>
    %316 = vector.broadcast %310 : vector<8x1xf32> to vector<8x10xf32>
    %317 = vector.broadcast %14 : vector<1x10xf32> to vector<8x10xf32>
    %318 = arith.mulf %316, %317 : vector<8x10xf32>
    %319 = vector.broadcast %16 : vector<1x10xf32> to vector<8x10xf32>
    %320 = arith.addf %318, %319 : vector<8x10xf32>
    %cst_77 = arith.constant 0.00999999977 : f32
    %321 = vector.broadcast %cst_77 : f32 to vector<8x10xf32>
    %322 = arith.mulf %321, %320 : vector<8x10xf32>
    %323 = arith.maximumf %320, %322 : vector<8x10xf32>
    %cst_78 = arith.constant dense<0.000000e+00> : vector<8x128xf32>
    %324 = tpu.matmul %323, %1, %cst_78 {dimension_numbers = #tpu.dot_dimension_numbers<[1], [0], [0], [1], [0, 0, 1, 1], [], []>} : vector<8x10xf32>, vector<10x128xf32>, vector<8x128xf32> -> vector<8x128xf32>
    %325 = vector.broadcast %11 : vector<1x128xf32> to vector<8x128xf32>
    %326 = arith.addf %324, %325 : vector<8x128xf32>
    %cst_79 = arith.constant dense<0.000000e+00> : vector<8x128xf32>
    %327 = tpu.matmul %297, %2, %cst_79 {dimension_numbers = #tpu.dot_dimension_numbers<[1], [0], [0], [1], [0, 0, 1, 1], [], []>} : vector<8x10xf32>, vector<10x128xf32>, vector<8x128xf32> -> vector<8x128xf32>
    %328 = vector.broadcast %12 : vector<1x128xf32> to vector<8x128xf32>
    %329 = arith.addf %327, %328 : vector<8x128xf32>
    %330 = vector.extract_strided_slice %326 {offsets = [0, 0], sizes = [8, 20], strides = [1, 1]} : vector<8x128xf32> to vector<8x20xf32>
    %331 = vector.extract_strided_slice %329 {offsets = [0, 0], sizes = [8, 20], strides = [1, 1]} : vector<8x128xf32> to vector<8x20xf32>
    %332 = arith.addf %330, %331 : vector<8x20xf32>
    %cst_80 = arith.constant 5.000000e-01 : f32
    %333 = vector.broadcast %cst_80 : f32 to vector<8x20xf32>
    %334 = arith.mulf %333, %332 : vector<8x20xf32>
    %335 = math.tanh %334 : vector<8x20xf32>
    %cst_81 = arith.constant 1.000000e+00 : f32
    %336 = vector.broadcast %cst_81 : f32 to vector<8x20xf32>
    %337 = arith.addf %335, %336 : vector<8x20xf32>
    %cst_82 = arith.constant 5.000000e-01 : f32
    %338 = vector.broadcast %cst_82 : f32 to vector<8x20xf32>
    %339 = arith.mulf %338, %337 : vector<8x20xf32>
    %340 = vector.extract_strided_slice %339 {offsets = [0, 0], sizes = [8, 10], strides = [1, 1]} : vector<8x20xf32> to vector<8x10xf32>
    %341 = vector.extract_strided_slice %339 {offsets = [0, 10], sizes = [8, 10], strides = [1, 1]} : vector<8x20xf32> to vector<8x10xf32>
    %342 = vector.extract_strided_slice %326 {offsets = [0, 20], sizes = [8, 10], strides = [1, 1]} : vector<8x128xf32> to vector<8x10xf32>
    %343 = vector.extract_strided_slice %329 {offsets = [0, 20], sizes = [8, 10], strides = [1, 1]} : vector<8x128xf32> to vector<8x10xf32>
    %344 = arith.mulf %340, %343 : vector<8x10xf32>
    %345 = arith.addf %342, %344 : vector<8x10xf32>
    %346 = math.tanh %345 : vector<8x10xf32>
    %cst_83 = arith.constant 1.000000e+00 : f32
    %347 = vector.broadcast %cst_83 : f32 to vector<8x10xf32>
    %348 = arith.subf %347, %341 : vector<8x10xf32>
    %349 = arith.mulf %348, %346 : vector<8x10xf32>
    %350 = arith.mulf %341, %297 : vector<8x10xf32>
    %351 = arith.addf %349, %350 : vector<8x10xf32>
    %cst_84 = arith.constant dense<0.000000e+00> : vector<8x7xf32>
    %352 = tpu.matmul %351, %4, %cst_84 {dimension_numbers = #tpu.dot_dimension_numbers<[1], [0], [0], [1], [0, 0, 1, 1], [], []>} : vector<8x10xf32>, vector<10x7xf32>, vector<8x7xf32> -> vector<8x7xf32>
    %353 = vector.broadcast %18 : vector<1x7xf32> to vector<8x7xf32>
    %354 = arith.addf %352, %353 : vector<8x7xf32>
    %cst_85 = arith.constant dense<0xFF800000> : vector<8xf32>
    %355 = vector.multi_reduction <maximumf>, %354, %cst_85 [1] : vector<8x7xf32> to vector<8xf32>
    %356 = vector.shape_cast %355 : vector<8xf32> to vector<8x1xf32>
    %357 = vector.broadcast %356 : vector<8x1xf32> to vector<8x7xf32>
    %358 = arith.subf %354, %357 : vector<8x7xf32>
    %359 = math.exp %358 : vector<8x7xf32>
    %cst_86 = arith.constant dense<0.000000e+00> : vector<8xf32>
    %360 = vector.multi_reduction <add>, %359, %cst_86 [1] : vector<8x7xf32> to vector<8xf32>
    %361 = vector.shape_cast %360 : vector<8xf32> to vector<8x1xf32>
    %362 = math.log %361 : vector<8x1xf32>
    %cst_87 = arith.constant 0.000000e+00 : f32
    %363 = vector.broadcast %cst_87 : f32 to vector<8x1xf32>
    %364 = arith.subf %363, %362 : vector<8x1xf32>
    %365 = vector.extract_strided_slice %6 {offsets = [5, 0], sizes = [1, 16], strides = [1, 1]} : vector<8x16xf32> to vector<1x16xf32>
    %366 = vector.broadcast %364 : vector<8x1xf32> to vector<8x16xf32>
    %367 = vector.broadcast %365 : vector<1x16xf32> to vector<8x16xf32>
    %368 = arith.mulf %366, %367 : vector<8x16xf32>
    %369 = arith.addf %315, %368 : vector<8x16xf32>
    %370 = vector.broadcast %364 : vector<8x1xf32> to vector<8x10xf32>
    %371 = vector.broadcast %14 : vector<1x10xf32> to vector<8x10xf32>
    %372 = arith.mulf %370, %371 : vector<8x10xf32>
    %373 = vector.broadcast %16 : vector<1x10xf32> to vector<8x10xf32>
    %374 = arith.addf %372, %373 : vector<8x10xf32>
    %cst_88 = arith.constant 0.00999999977 : f32
    %375 = vector.broadcast %cst_88 : f32 to vector<8x10xf32>
    %376 = arith.mulf %375, %374 : vector<8x10xf32>
    %377 = arith.maximumf %374, %376 : vector<8x10xf32>
    %cst_89 = arith.constant dense<0.000000e+00> : vector<8x128xf32>
    %378 = tpu.matmul %377, %1, %cst_89 {dimension_numbers = #tpu.dot_dimension_numbers<[1], [0], [0], [1], [0, 0, 1, 1], [], []>} : vector<8x10xf32>, vector<10x128xf32>, vector<8x128xf32> -> vector<8x128xf32>
    %379 = vector.broadcast %11 : vector<1x128xf32> to vector<8x128xf32>
    %380 = arith.addf %378, %379 : vector<8x128xf32>
    %cst_90 = arith.constant dense<0.000000e+00> : vector<8x128xf32>
    %381 = tpu.matmul %351, %2, %cst_90 {dimension_numbers = #tpu.dot_dimension_numbers<[1], [0], [0], [1], [0, 0, 1, 1], [], []>} : vector<8x10xf32>, vector<10x128xf32>, vector<8x128xf32> -> vector<8x128xf32>
    %382 = vector.broadcast %12 : vector<1x128xf32> to vector<8x128xf32>
    %383 = arith.addf %381, %382 : vector<8x128xf32>
    %384 = vector.extract_strided_slice %380 {offsets = [0, 0], sizes = [8, 20], strides = [1, 1]} : vector<8x128xf32> to vector<8x20xf32>
    %385 = vector.extract_strided_slice %383 {offsets = [0, 0], sizes = [8, 20], strides = [1, 1]} : vector<8x128xf32> to vector<8x20xf32>
    %386 = arith.addf %384, %385 : vector<8x20xf32>
    %cst_91 = arith.constant 5.000000e-01 : f32
    %387 = vector.broadcast %cst_91 : f32 to vector<8x20xf32>
    %388 = arith.mulf %387, %386 : vector<8x20xf32>
    %389 = math.tanh %388 : vector<8x20xf32>
    %cst_92 = arith.constant 1.000000e+00 : f32
    %390 = vector.broadcast %cst_92 : f32 to vector<8x20xf32>
    %391 = arith.addf %389, %390 : vector<8x20xf32>
    %cst_93 = arith.constant 5.000000e-01 : f32
    %392 = vector.broadcast %cst_93 : f32 to vector<8x20xf32>
    %393 = arith.mulf %392, %391 : vector<8x20xf32>
    %394 = vector.extract_strided_slice %393 {offsets = [0, 0], sizes = [8, 10], strides = [1, 1]} : vector<8x20xf32> to vector<8x10xf32>
    %395 = vector.extract_strided_slice %393 {offsets = [0, 10], sizes = [8, 10], strides = [1, 1]} : vector<8x20xf32> to vector<8x10xf32>
    %396 = vector.extract_strided_slice %380 {offsets = [0, 20], sizes = [8, 10], strides = [1, 1]} : vector<8x128xf32> to vector<8x10xf32>
    %397 = vector.extract_strided_slice %383 {offsets = [0, 20], sizes = [8, 10], strides = [1, 1]} : vector<8x128xf32> to vector<8x10xf32>
    %398 = arith.mulf %394, %397 : vector<8x10xf32>
    %399 = arith.addf %396, %398 : vector<8x10xf32>
    %400 = math.tanh %399 : vector<8x10xf32>
    %cst_94 = arith.constant 1.000000e+00 : f32
    %401 = vector.broadcast %cst_94 : f32 to vector<8x10xf32>
    %402 = arith.subf %401, %395 : vector<8x10xf32>
    %403 = arith.mulf %402, %400 : vector<8x10xf32>
    %404 = arith.mulf %395, %351 : vector<8x10xf32>
    %405 = arith.addf %403, %404 : vector<8x10xf32>
    %cst_95 = arith.constant dense<0.000000e+00> : vector<8x7xf32>
    %406 = tpu.matmul %405, %4, %cst_95 {dimension_numbers = #tpu.dot_dimension_numbers<[1], [0], [0], [1], [0, 0, 1, 1], [], []>} : vector<8x10xf32>, vector<10x7xf32>, vector<8x7xf32> -> vector<8x7xf32>
    %407 = vector.broadcast %18 : vector<1x7xf32> to vector<8x7xf32>
    %408 = arith.addf %406, %407 : vector<8x7xf32>
    %cst_96 = arith.constant dense<0xFF800000> : vector<8xf32>
    %409 = vector.multi_reduction <maximumf>, %408, %cst_96 [1] : vector<8x7xf32> to vector<8xf32>
    %410 = vector.shape_cast %409 : vector<8xf32> to vector<8x1xf32>
    %411 = vector.broadcast %410 : vector<8x1xf32> to vector<8x7xf32>
    %412 = arith.subf %408, %411 : vector<8x7xf32>
    %413 = math.exp %412 : vector<8x7xf32>
    %cst_97 = arith.constant dense<0.000000e+00> : vector<8xf32>
    %414 = vector.multi_reduction <add>, %413, %cst_97 [1] : vector<8x7xf32> to vector<8xf32>
    %415 = vector.shape_cast %414 : vector<8xf32> to vector<8x1xf32>
    %416 = math.log %415 : vector<8x1xf32>
    %cst_98 = arith.constant 0.000000e+00 : f32
    %417 = vector.broadcast %cst_98 : f32 to vector<8x1xf32>
    %418 = arith.subf %417, %416 : vector<8x1xf32>
    %419 = vector.extract_strided_slice %6 {offsets = [6, 0], sizes = [1, 16], strides = [1, 1]} : vector<8x16xf32> to vector<1x16xf32>
    %420 = vector.broadcast %418 : vector<8x1xf32> to vector<8x16xf32>
    %421 = vector.broadcast %419 : vector<1x16xf32> to vector<8x16xf32>
    %422 = arith.mulf %420, %421 : vector<8x16xf32>
    %423 = arith.addf %369, %422 : vector<8x16xf32>
    %424 = vector.broadcast %20 : vector<1x16xf32> to vector<8x16xf32>
    %425 = arith.addf %423, %424 : vector<8x16xf32>
    %cst_99 = arith.constant 0.00999999977 : f32
    %426 = vector.broadcast %cst_99 : f32 to vector<8x16xf32>
    %427 = arith.mulf %426, %425 : vector<8x16xf32>
    %428 = arith.maximumf %425, %427 : vector<8x16xf32>
    %cst_100 = arith.constant dense<0.000000e+00> : vector<8x128xf32>
    %429 = tpu.matmul %428, %7, %cst_100 {dimension_numbers = #tpu.dot_dimension_numbers<[1], [0], [0], [1], [0, 0, 1, 1], [], []>} : vector<8x16xf32>, vector<16x128xf32>, vector<8x128xf32> -> vector<8x128xf32>
    %430 = vector.broadcast %21 : vector<1x128xf32> to vector<8x128xf32>
    %431 = arith.addf %429, %430 : vector<8x128xf32>
    %cst_101 = arith.constant 5.000000e-01 : f32
    %432 = vector.broadcast %cst_101 : f32 to vector<8x128xf32>
    %433 = arith.mulf %432, %431 : vector<8x128xf32>
    %434 = math.tanh %433 : vector<8x128xf32>
    %cst_102 = arith.constant 1.000000e+00 : f32
    %435 = vector.broadcast %cst_102 : f32 to vector<8x128xf32>
    %436 = arith.addf %434, %435 : vector<8x128xf32>
    %cst_103 = arith.constant 5.000000e-01 : f32
    %437 = vector.broadcast %cst_103 : f32 to vector<8x128xf32>
    %438 = arith.mulf %437, %436 : vector<8x128xf32>
    %c0_104 = arith.constant 0 : index
    %c0_105 = arith.constant 0 : index
    %439 = vector.load %arg3[%c0_104, %c0_105] : memref<8x128xf32, #tpu.memory_space<vmem>>, vector<8x128xf32>
    tpu.vector_store %arg3[%c0_104, %c0_105], %438 {strides = array<i32>} : memref<8x128xf32, #tpu.memory_space<vmem>>, vector<8x128xf32>,
    return
  }
  func.func @transform_0(%arg0: i32) -> (i32, i32) {
    %c0_i32 = arith.constant 0 : i32
    %c0_i32_0 = arith.constant 0 : i32
    return %arg0, %c0_i32 : i32, i32
  }
  func.func @transform_1(%arg0: i32) -> (i32, i32) {
    %c0_i32 = arith.constant 0 : i32
    %c0_i32_0 = arith.constant 0 : i32
    %c0_i32_1 = arith.constant 0 : i32
    return %c0_i32, %c0_i32_0 : i32, i32
  }
  func.func @transform_2(%arg0: i32) -> (i32, i32) {
    %c0_i32 = arith.constant 0 : i32
    %c0_i32_0 = arith.constant 0 : i32
    return %arg0, %c0_i32 : i32, i32
  }
}

</mosaic_0001>

<bundles_post_ra>
// kernel: tpu_custom_call.1
= control target key start
LH: loop header
LB: loop body
LE: loop exit
PB: predicated region body
PF: predicated region fallthrough
CT: control target
= control target key end

     0   :  { %7 = vsyncpa [#allocation3], 0  ;;  %s3087_s0 = inlined_call_operand.hbm [shape: f32[8,56], index: 0, kind: input, shape index: {}]   ;;  %s3088_s1 = inlined_call_operand.hbm [shape: f32[144,128], index: 1, kind: input, shape index: {}]   ;;  %s3089_s2 = inlined_call_operand.hbm [shape: f32[8,128], index: 2, kind: output, shape index: {}]  }
   0x1   :  { %8 = vsyncpa [#allocation6], 0 }
   0x2   :  { %9 = vsyncpa [#allocation4], 0  ;;  %s2702_s9 = smov [#allocation2]   ;;  %s2703_s11 = smov [#allocation5]  }
   0x3   :  { %s16_s10 = sshll.u32 %s2702_s9, 4  ;;  %s25_s12 = sshll.u32 %s2703_s11, 4  ;;  %s17_s10 = int_to_ptr.vmem [resolvable:$true] %s16_s10  ;;  %s2730_s12 = int_to_ptr.vmem [resolvable:$true] %s25_s12 }
   0x4   :  { %s2630_s15 = scalar_lea.hbm %s3087_s0, 128 }
   0x5   :  { %p2631_p0 = scmp.ne.s32.totalorder %s3087_s0, %s2630_s15  ;;  %p2634_p1 = scmp.lt.u32.totalorder %s2630_s15, %s3087_s0 }
   0x7   :  { %p2636_p2 = pnand %p2634_p1, %p2631_p0 }
   0x9   :  { %2639 = shalt.err (!%p2636_p2)
}
   0xa   :  { %s2640_s20 = scalar_lea.vmem %s17_s10, 128  ;;  %p2645_p4 = scmp.lt.s32.totalorder %s17_s10, %s17_s10 }
   0xb   :  { %p2641_p3 = scmp.ne.s32.totalorder %s17_s10, %s2640_s20  ;;  %p2646_p5 = scmp.lt.s32.totalorder %s2640_s20, %s2640_s20 }
   0xd   :  { %p2647_p6 = por %p2646_p5, %p2645_p4 }
   0xf   :  { %p2648_p7 = pnand %p2647_p6, %p2641_p3 }
  0x11   :  { %2651 = shalt.err (!%p2648_p7)
}
  0x12   :  { %19 = dma.hbm_to_vmem [thread:$0]  %s3087_s0, 128, %s17_s10, [#allocation3]  }
  0x13   :  { %s2652_s25 = scalar_lea.hbm %s3088_s1, 2304 }
  0x14   :  { %p2653_p8 = scmp.ne.s32.totalorder %s3088_s1, %s2652_s25  ;;  %p2656_p9 = scmp.lt.u32.totalorder %s2652_s25, %s3088_s1 }
  0x16   :  { %p2658_p10 = pnand %p2656_p9, %p2653_p8 }
  0x18   :  { %2661 = shalt.err (!%p2658_p10)
}
  0x19   :  { %s2662_s30 = scalar_lea.vmem %s2730_s12, 2304  ;;  %p2667_p12 = scmp.lt.s32.totalorder %s2730_s12, %s2730_s12 }
  0x1a   :  { %p2663_p11 = scmp.ne.s32.totalorder %s2730_s12, %s2662_s30  ;;  %p2668_p13 = scmp.lt.s32.totalorder %s2662_s30, %s2662_s30 }
  0x1c   :  { %p2669_p0 = por %p2668_p13, %p2667_p12 }
  0x1e   :  { %p2670_p1 = pnand %p2669_p0, %p2663_p11 }
  0x20   :  { %2673 = shalt.err (!%p2670_p1)
}
  0x21   :  { %s2704_s0 = smov 128   ;;  %s2705_s3 = smov 8  }
  0x22   :  { %31 = dma.hbm_to_vmem [thread:$0]  %s3088_s1, 2304, %s2730_s12, [#allocation6], %s2704_s0, %s2704_s0, %s2705_s3  }
  0x23   :  { %2696 = dma.done.wait [#allocation3], 128  }
  0x24   :  { %2697 = vsyncadd [#allocation3], 4294967168 }
  0x25   :  { %2698 = dma.done.wait [#allocation6], 2304  }
  0x26   :  { %2699 = vsyncadd [#allocation6], 4294964992  ;;  %v2706_v0 = vmov 0.0|0.0   ;;  %vm2707_vm0 = vmmov 0   ;;  %v2708_v1 = vmov 0.0   ;;  %v38_v2 = vld [vmem:[#allocation5] sm:$0xff] }
  0x27   :  { %2457 = vmatprep.subr.bf16.mxu0 %v2706_v0  ;;  %2300 = vmatprep.mubr.msk.f32.mxu0 %vm2707_vm0, %v2708_v1  ;;  %v39_v3 = vld [vmem:[#allocation5 + $0x8] sm:$0xff]  ;;  %v40_v4 = vld [vmem:[#allocation5 + $0x10] sm:$0xff]  ;;  %v41_v6 = vld [vmem:[#allocation5 + $0x18] sm:$0xff]  ;;  %vm68_vm1 = vcmask 457728   ;;  %s2709_s1 = smov 20   ;;  %v2710_v25 = vmov 10  }
  0x28   :  { %2466 = vmatprep.subr.bf16.mxu1 %v2706_v0  ;;  %2307 = vmatprep.mubr.msk.f32.mxu1 %vm2707_vm0, %v2708_v1  ;;  %v2458_v5 = vpack.c.bf16 %v39_v3, %v38_v2  ;;  %v2461_v7 = vpack.c.bf16 %v41_v6, %v40_v4  ;;  %v42_v8 = vld [vmem:[#allocation5 + $0x20] sm:$0xff]  ;;  %v43_v9 = vld [vmem:[#allocation5 + $0x28] sm:$0xff]  ;;  %v44_v11 = vld [vmem:[#allocation5 + $0x30] sm:$0xff]  ;;  %s2711_s6 = smov 118   ;;  %vm189_vm2 = vcmask 1041408   ;;  %vm2712_vm3 = vmmov 1  }
  0x29   :  { %v2464_v10 = vpack.c.bf16 %v43_v9, %v42_v8  ;;  %v63_v12 = vld [vmem:[#allocation2] sm:$0xff]  ;;  %v2159_v13 = vld [vmem:[#allocation5 + $0x80] ss:$0 sm:$0xff]  ;;  %v2161_v20 = vld [vmem:[#allocation5 + $0x81] ss:$0 sm:$0xff]  ;;  %2566 = vset.pattern.permute.xlu1 %v2710_v25  ;;  %2567 = vset.pattern.permute.xlu0 %v2710_v25  ;;  %vm185_vm5 = vcmask 80896  }
  0x2a   :  { %2459 = vmatpush3.bf16.msra.mxu0 %v2458_v5  ;;  %v45_v31 = vld [vmem:[#allocation5 + $0x38] sm:$0xff]  ;;  %v46_v32 = vld [vmem:[#allocation5 + $0x40] sm:$0x3]  ;;  %vm2782_vm4 = vmpackc.low %vm189_vm2, %vm2712_vm3  ;;  %s2713_s7 = smov 108   ;;  %vm451_vm6 = vcmask 56320   ;;  %vm2064_vm7 = vcmask 130048  }
  0x2b   :  { %2460 = vmatprep.subr.bf16.mxu0 %v2706_v0  ;;  %v2778_v33 = vpack.c.bf16 %v46_v32, %v45_v31  ;;  %v47_v35 = vld [vmem:[#allocation5 + $0x48] sm:$0xff]  ;;  %v48_v36 = vld [vmem:[#allocation5 + $0x50] sm:$0x3]  ;;  %v2796_v38 = vld [vmem:[#allocation5 + $0x84] ss:$0 sm:$0xff]  ;;  %s2714_s8 = smov [#allocation7]  }
  0x2c   :  { %v2790_v37 = vpack.c.bf16 %v48_v36, %v47_v35  ;;  %v2798_v39 = vld [vmem:[#allocation5 + $0x85] ss:$0 sm:$0xff]  ;;  %v2812_v48 = vld [vmem:[#allocation5 + $0x83] ss:$0 sm:$0xff]  ;;  %v2816_v52 = vld [vmem:[#allocation5 + $0x82] ss:$0 sm:$0xff] }
  0x2d   :  { %2469 = vmatpush3.bf16.msk.msra.mxu1 %vm2782_vm4, %v2778_v33  ;;  %v49_v63 = vld [vmem:[#allocation5 + $0x58] sm:$0xff]  ;;  %v50_v2 = vld [vmem:[#allocation5 + $0x60] sm:$0x3]  ;;  %s2149_s9 = sshll.u32 %s2714_s8, 4  ;;  %s2150_s9 = int_to_ptr.vmem [resolvable:$true] %s2149_s9 }
  0x2e   :  { %2462 = vmatpush3.bf16.msra.mxu0 %v2461_v7  ;;  %2470 = vmatprep.subr.bf16.mxu1 %v2706_v0  ;;  %v2820_v3 = vpack.c.bf16 %v50_v2, %v49_v63  ;;  %s2674_s10 = scalar_lea.vmem %s2150_s9, 128  ;;  %p2679_p3 = scmp.lt.s32.totalorder %s2150_s9, %s2150_s9 }
  0x2f   :  { %2463 = vmatprep.subr.bf16.mxu0 %v2706_v0  ;;  %p2675_p2 = scmp.ne.s32.totalorder %s2150_s9, %s2674_s10  ;;  %p2680_p4 = scmp.lt.s32.totalorder %s2674_s10, %s2674_s10 }
  0x31   :  { %p2681_p5 = por %p2680_p4, %p2679_p3 }
  0x32   :  { %2465 = vmatpush3.bf16.msra.mxu0 %v2464_v10 }
  0x33   :  { %2298 = vmatprep.subr.mxu0 %v2708_v1  ;;  %p2682_p6 = pnand %p2681_p5, %p2675_p2 }
  0x36   :  { %2299 = vmatpush3.msra.mxu0 %v44_v11  ;;  %v2843_v11 = vld [vmem:[#allocation5 + $0x86] ss:$0 sm:$0xff] }
  0x37   :  { %2301 = vmatmul.mubr.msk.f32.vlgmr.msra.gmra.mrb[0].mxu0 %vm68_vm1, %v63_v12  ;;  %2482 = vmatprep.subr.bf16.mxu0 %v2706_v0 }
  0x38   :  { %2335 = vmatprep.mubr.msk.f32.mxu0 %vm2707_vm0, %v2708_v1  ;;  %2485 = vmatpush3.bf16.msk.msra.mxu0 %vm2782_vm4, %v2790_v37 }
  0x39   :  { %2490 = vmatprep.subr.bf16.mxu0 %v2706_v0 }
 0x10a   :  { %v138_v14 = vpop.f32.mrb[0].mxu0 }
 0x10b   :  { %v139_v15 = vadd.f32 %v2159_v13, %v138_v14  ;;  %v2302_v16 = vpop.f32.mrb[1].mxu0 }
 0x10d   :  { %v142_v17 = vmul.f32 0.5, %v139_v15 }
 0x10f   :  { %2568 = vtanh.f32 %v142_v17 }
 0x119   :  { %v2569_v18 = vpop.eup %2568 }
 0x11a   :  { %v144_v19 = vadd.f32 1.0, %v2569_v18 }
 0x11c   :  { %v145_v21 = vmul.f32 0.5, %v144_v19 }
 0x11e   :  { %v150_v22 = vmul.f32 %v2161_v20, %v145_v21  ;;  %v157_v27 = vsub.f32 1.0, %v145_v21 }
 0x120   :  { %152 = vrot.lane.b32.xlu0 %v150_v22, %s2709_s1 }
 0x192   :  { %v153_v23 = vpop.permute.xlu0 %152 }
 0x193   :  { %v155_v24 = vadd.f32 %v153_v23, %v139_v15 }
 0x195   :  { %2570 = vtanh.f32 %v155_v24 }
 0x19f   :  { %v2571_v26 = vpop.eup %2570 }
 0x1a0   :  { %159 = vrot.lane.b32.xlu0 %v2571_v26, %s2711_s6 }
 0x212   :  { %v160_v28 = vpop.permute.xlu0 %159 }
 0x213   :  { %v2775_v29 = vmul.f32 %v160_v28, %v157_v27 }
 0x215   :  { %v163_v30 = vmul.f32 0.0, %v2775_v29 }
 0x217   :  { %166 = vperm.xlu1 %2566, %v163_v30  }
 0x21b   :  { %268 = vrot.lane.b32.xlu1 %v2775_v29, %s2711_s6 }
 0x296   :  { %v167_v40 = vpop.permute.xlu1 %166 }
 0x297   :  { %v173_v41 = vmul.f32 %v2796_v38, %v167_v40 }
 0x299   :  { %v178_v42 = vadd.f32 %v2798_v39, %v173_v41 }
 0x29a   :  { %v269_v45 = vpop.permute.xlu1 %268 }
 0x29b   :  { %v179_v43 = vmul.f32 0.01, %v178_v42 }
 0x29d   :  { %v180_v44 = vmax.f32 %v178_v42, %v179_v43 }
 0x29f   :  { %2308 = vmatmul.mubr.msk.f32.vlgmr.msra.gmra.mrb[0].mxu1 %vm185_vm5, %v180_v44 }
 0x2a0   :  { %2473 = vmatpush3.bf16.msk.msra.mxu1 %vm2782_vm4, %v2790_v37  ;;  %2314 = vmatprep.mubr.msk.f32.mxu1 %vm2707_vm0, %v2708_v1 }
 0x2a1   :  { %2474 = vmatprep.subr.bf16.mxu1 %v2706_v0 }
 0x2a3   :  { %2315 = vmatmul.mubr.msk.f32.vlgmr.msra.gmra.mrb[2].mxu1 %vm185_vm5, %v269_v45 }
 0x2a4   :  { %2321 = vmatprep.mubr.msk.f32.mxu1 %vm2707_vm0, %v2708_v1  ;;  %2477 = vmatpush3.bf16.msk.msra.mxu1 %vm2782_vm4, %v2820_v3 }
 0x2a5   :  { %2478 = vmatprep.subr.bf16.mxu1 %v2706_v0 }
 0x372   :  { %v259_v46 = vpop.f32.mrb[0].mxu1 }
 0x373   :  { %v2309_v47 = vpop.f32.mrb[1].mxu1  ;;  %v260_v53 = vadd.f32 %v2816_v52, %v259_v46 }
 0x376   :  { %v341_v49 = vpop.f32.mrb[2].mxu1 }
 0x377   :  { %v342_v50 = vadd.f32 %v2812_v48, %v341_v49  ;;  %v2316_v51 = vpop.f32.mrb[3].mxu1 }
 0x379   :  { %351 = vrot.lane.b32.xlu0 %v342_v50, %s2713_s7  ;;  %v345_v54 = vadd.f32 %v342_v50, %v260_v53 }
 0x37b   :  { %v346_v55 = vmul.f32 0.5, %v345_v54 }
 0x37d   :  { %2572 = vtanh.f32 %v346_v55 }
 0x387   :  { %v2573_v56 = vpop.eup %2572 }
 0x388   :  { %v348_v57 = vadd.f32 1.0, %v2573_v56 }
 0x38a   :  { %v349_v58 = vmul.f32 0.5, %v348_v57 }
 0x38c   :  { %v361_v5 = vsub.f32 1.0, %v349_v58  ;;  %v367_v7 = vmul.f32 %v349_v58, %v2775_v29 }
 0x3eb   :  { %v352_v59 = vpop.permute.xlu0 %351 }
 0x3ec   :  { %v354_v60 = vmul.f32 %v352_v59, %v349_v58 }
 0x3ee   :  { %356 = vrot.lane.b32.xlu1 %v354_v60, %s2709_s1 }
 0x460   :  { %v357_v61 = vpop.permute.xlu1 %356 }
 0x461   :  { %v359_v62 = vadd.f32 %v357_v61, %v260_v53 }
 0x463   :  { %2574 = vtanh.f32 %v359_v62 }
 0x46d   :  { %v2575_v4 = vpop.eup %2574 }
 0x46e   :  { %363 = vrot.lane.b32.xlu0 %v2575_v4, %s2711_s6 }
 0x4e0   :  { %v364_v6 = vpop.permute.xlu0 %363 }
 0x4e1   :  { %v366_v8 = vmul.f32 %v364_v6, %v361_v5 }
 0x4e3   :  { %v368_v9 = vadd.f32 %v367_v7, %v366_v8 }
 0x4e5   :  { %374 = vrot.lane.b32.xlu1 %v368_v9, %s2711_s6 }
 0x557   :  { %v375_v10 = vpop.permute.xlu1 %374 }
 0x558   :  { %2322 = vmatmul.mubr.msk.f32.vlgmr.msra.gmra.mrb[4].mxu1 %vm185_vm5, %v375_v10  ;;  %2336 = vmatmul.mubr.msk.f32.vlgmr.msra.gmra.mrb[2].mxu0 %vm185_vm5, %v375_v10 }
 0x559   :  { %2481 = vmatpush3.bf16.msk.msra.mxu1 %vm2782_vm4, %v2778_v33  ;;  %2328 = vmatprep.mubr.msk.f32.mxu1 %vm2707_vm0, %v2708_v1 }
 0x55a   :  { %2486 = vmatprep.subr.bf16.mxu1 %v2706_v0  ;;  %2493 = vmatpush3.bf16.msk.msra.mxu0 %vm2782_vm4, %v2778_v33 }
 0x55b   :  { %2349 = vmatprep.mubr.msk.f32.mxu0 %vm2707_vm0, %v2708_v1  ;;  %2498 = vmatprep.subr.bf16.mxu0 %v2706_v0 }
 0x62b   :  { %v447_v12 = vpop.f32.mrb[4].mxu1  ;;  %v612_v13 = vpop.f32.mrb[2].mxu0 }
 0x62c   :  { %v448_v14 = vadd.f32 %v2843_v11, %v447_v12  ;;  %v2323_v15 = vpop.f32.mrb[5].mxu1  ;;  %v2337_v16 = vpop.f32.mrb[3].mxu0  ;;  %v613_v18 = vadd.f32 %v2812_v48, %v612_v13 }
 0x62d   :  { %v2894_v15 = vld [vmem:[#allocation5 + $0x68] sm:$0xff] }
 0x62e   :  { %v452_v17 = vsel %vm451_vm6, %v448_v14, -inf }
 0x62f   :  { %453 = vmax.xlane.f32.xlu0 %v452_v17 }
 0x645   :  { %622 = vrot.lane.b32.xlu0 %v613_v18, %s2713_s7 }
 0x6bc   :  { %v454_v19 = vpop.xlane.xlu0 %453 }
 0x6bd   :  { %v455_v20 = vsub.f32 %v448_v14, %v454_v19 }
 0x6bf   :  { %v456_v21 = vmul.f32 1.442695, %v455_v20 }
 0x6c0   :  { %v623_v45 = vpop.permute.xlu0 %622 }
 0x6c1   :  { %2576 = vpow2.f32 %v456_v21 }
 0x6cb   :  { %v2577_v22 = vpop.eup %2576 }
 0x6cc   :  { %v458_v23 = vsel %vm451_vm6, %v2577_v22, 0.0 }
 0x6cd   :  { %459 = vadd.xlane.f32.xlu1 %v458_v23 }
 0x75a   :  { %v460_v24 = vpop.xlane.xlu1 %459 }
 0x75b   :  { %2578 = vlog2.f32 %v460_v24 }
 0x765   :  { %v2579_v25 = vpop.eup %2578 }
 0x766   :  { %v2850_v26 = vmul.f32 0.6931472, %v2579_v25 }
 0x768   :  { %v463_v27 = vsub.f32 0.0, %v2850_v26 }
 0x76a   :  { %v469_v28 = vmul.f32 %v2796_v38, %v463_v27 }
 0x76c   :  { %v470_v29 = vadd.f32 %v2798_v39, %v469_v28 }
 0x76e   :  { %v471_v30 = vmul.f32 0.01, %v470_v29 }
 0x770   :  { %v472_v31 = vmax.f32 %v470_v29, %v471_v30 }
 0x772   :  { %2329 = vmatmul.mubr.msk.f32.vlgmr.msra.gmra.mrb[6].mxu1 %vm185_vm5, %v472_v31 }
 0x773   :  { %2489 = vmatpush3.bf16.msk.msra.mxu1 %vm2782_vm4, %v2820_v3  ;;  %2342 = vmatprep.mubr.msk.f32.mxu1 %vm2707_vm0, %v2708_v1 }
 0x774   :  { %2494 = vmatprep.subr.bf16.mxu1 %v2706_v0 }
 0x845   :  { %v542_v32 = vpop.f32.mrb[6].mxu1 }
 0x846   :  { %v543_v35 = vadd.f32 %v2816_v52, %v542_v32  ;;  %v2330_v36 = vpop.f32.mrb[7].mxu1 }
 0x848   :  { %v616_v40 = vadd.f32 %v613_v18, %v543_v35 }
 0x84a   :  { %v617_v41 = vmul.f32 0.5, %v616_v40 }
 0x84c   :  { %2580 = vtanh.f32 %v617_v41 }
 0x856   :  { %v2581_v42 = vpop.eup %2580 }
 0x857   :  { %v619_v43 = vadd.f32 1.0, %v2581_v42 }
 0x859   :  { %v620_v44 = vmul.f32 0.5, %v619_v43 }
 0x85b   :  { %v625_v46 = vmul.f32 %v623_v45, %v620_v44  ;;  %v632_v51 = vsub.f32 1.0, %v620_v44  ;;  %v638_v54 = vmul.f32 %v620_v44, %v368_v9  ;;  %v464_v9 = vlaneseq }
 0x85d   :  { %627 = vrot.lane.b32.xlu1 %v625_v46, %s2709_s1  ;;  %v2890_v12 = vshrl.u32 %v464_v9, 7 }
 0x85f   :  { %v466_v13 = vsub.s32 0, %v2890_v12  ;;  %v729_v14 = vsub.s32 1, %v2890_v12 }
 0x861   :  { %v467_v17 = vrot.slane %v2894_v15, %v466_v13  ;;  %v730_v18 = vrot.slane %v2894_v15, %v729_v14 }
 0x863   :  { %v468_v21 = vmul.f32 %v467_v17, %v463_v27 }
 0x8cf   :  { %v628_v47 = vpop.permute.xlu1 %627 }
 0x8d0   :  { %v630_v49 = vadd.f32 %v628_v47, %v543_v35 }
 0x8d2   :  { %2582 = vtanh.f32 %v630_v49 }
 0x8dc   :  { %v2583_v50 = vpop.eup %2582 }
 0x8dd   :  { %634 = vrot.lane.b32.xlu0 %v2583_v50, %s2711_s6 }
 0x94f   :  { %v635_v53 = vpop.permute.xlu0 %634 }
 0x950   :  { %v637_v55 = vmul.f32 %v635_v53, %v632_v51 }
 0x952   :  { %v2867_v56 = vadd.f32 %v638_v54, %v637_v55 }
 0x954   :  { %641 = vrot.lane.b32.xlu1 %v2867_v56, %s2711_s6 }
 0x9c6   :  { %v642_v57 = vpop.permute.xlu1 %641 }
 0x9c7   :  { %2343 = vmatmul.mubr.msk.f32.vlgmr.msra.gmra.mrb[8].mxu1 %vm185_vm5, %v642_v57 }
 0x9c8   :  { %2497 = vmatpush3.bf16.msk.msra.mxu1 %vm2782_vm4, %v2790_v37  ;;  %2356 = vmatprep.mubr.msk.f32.mxu1 %vm2707_vm0, %v2708_v1 }
 0x9c9   :  { %2502 = vmatprep.subr.bf16.mxu1 %v2706_v0 }
 0x9cb   :  { %2357 = vmatmul.mubr.msk.f32.vlgmr.msra.gmra.mrb[10].mxu1 %vm185_vm5, %v642_v57 }
 0x9cc   :  { %2505 = vmatpush3.bf16.msk.msra.mxu1 %vm2782_vm4, %v2778_v33  ;;  %2370 = vmatprep.mubr.msk.f32.mxu1 %vm2707_vm0, %v2708_v1 }
 0x9cd   :  { %2510 = vmatprep.subr.bf16.mxu1 %v2706_v0 }
 0xa9a   :  { %v711_v58 = vpop.f32.mrb[8].mxu1 }
 0xa9b   :  { %v712_v59 = vadd.f32 %v2843_v11, %v711_v58  ;;  %v2344_v60 = vpop.f32.mrb[9].mxu1 }
 0xa9d   :  { %v715_v61 = vsel %vm451_vm6, %v712_v59, -inf }
 0xa9e   :  { %716 = vmax.xlane.f32.xlu0 %v715_v61  ;;  %v876_v62 = vpop.f32.mrb[10].mxu1 }
 0xa9f   :  { %v2358_v63 = vpop.f32.mrb[11].mxu1  ;;  %v877_v2 = vadd.f32 %v2812_v48, %v876_v62 }
 0xab4   :  { %886 = vrot.lane.b32.xlu0 %v877_v2, %s2713_s7 }
 0xb2b   :  { %v717_v4 = vpop.xlane.xlu0 %716 }
 0xb2c   :  { %v718_v5 = vsub.f32 %v712_v59, %v717_v4 }
 0xb2e   :  { %v719_v6 = vmul.f32 1.442695, %v718_v5 }
 0xb2f   :  { %v887_v41 = vpop.permute.xlu0 %886 }
 0xb30   :  { %2584 = vpow2.f32 %v719_v6  ;;  %v993_v6 = vsub.s32 2, %v2890_v12 }
 0xb3a   :  { %v2585_v7 = vpop.eup %2584 }
 0xb3b   :  { %v721_v8 = vsel %vm451_vm6, %v2585_v7, 0.0 }
 0xb3c   :  { %722 = vadd.xlane.f32.xlu1 %v721_v8  ;;  %v994_v8 = vrot.slane %v2894_v15, %v993_v6 }
 0xbc9   :  { %v723_v10 = vpop.xlane.xlu1 %722 }
 0xbca   :  { %2586 = vlog2.f32 %v723_v10 }
 0xbd4   :  { %v2587_v16 = vpop.eup %2586 }
 0xbd5   :  { %v725_v19 = vmul.f32 0.6931472, %v2587_v16 }
 0xbd7   :  { %v726_v20 = vsub.f32 0.0, %v725_v19 }
 0xbd9   :  { %v731_v22 = vmul.f32 %v730_v18, %v726_v20  ;;  %v733_v23 = vmul.f32 %v2796_v38, %v726_v20 }
 0xbdb   :  { %v2901_v24 = vadd.f32 %v731_v22, %v468_v21  ;;  %v734_v25 = vadd.f32 %v2798_v39, %v733_v23 }
 0xbdd   :  { %v735_v28 = vmul.f32 0.01, %v734_v25 }
 0xbdf   :  { %v736_v29 = vmax.f32 %v734_v25, %v735_v28 }
 0xbe1   :  { %2350 = vmatmul.mubr.msk.f32.vlgmr.msra.gmra.mrb[4].mxu0 %vm185_vm5, %v736_v29 }
 0xbe2   :  { %2501 = vmatpush3.bf16.msk.msra.mxu0 %vm2782_vm4, %v2820_v3  ;;  %2363 = vmatprep.mubr.msk.f32.mxu0 %vm2707_vm0, %v2708_v1 }
 0xbe3   :  { %2506 = vmatprep.subr.bf16.mxu0 %v2706_v0 }
 0xcb4   :  { %v806_v26 = vpop.f32.mrb[4].mxu0 }
 0xcb5   :  { %v807_v27 = vadd.f32 %v2816_v52, %v806_v26  ;;  %v2351_v30 = vpop.f32.mrb[5].mxu0 }
 0xcb7   :  { %v880_v31 = vadd.f32 %v877_v2, %v807_v27 }
 0xcb9   :  { %v881_v32 = vmul.f32 0.5, %v880_v31 }
 0xcbb   :  { %2588 = vtanh.f32 %v881_v32 }
 0xcc5   :  { %v2589_v35 = vpop.eup %2588 }
 0xcc6   :  { %v883_v36 = vadd.f32 1.0, %v2589_v35 }
 0xcc8   :  { %v884_v40 = vmul.f32 0.5, %v883_v36 }
 0xcca   :  { %v889_v42 = vmul.f32 %v887_v41, %v884_v40  ;;  %v896_v46 = vsub.f32 1.0, %v884_v40  ;;  %v902_v49 = vmul.f32 %v884_v40, %v2867_v56 }
 0xccc   :  { %891 = vrot.lane.b32.xlu1 %v889_v42, %s2709_s1 }
 0xd3e   :  { %v892_v43 = vpop.permute.xlu1 %891 }
 0xd3f   :  { %v894_v44 = vadd.f32 %v892_v43, %v807_v27 }
 0xd41   :  { %2590 = vtanh.f32 %v894_v44 }
 0xd4b   :  { %v2591_v45 = vpop.eup %2590 }
 0xd4c   :  { %898 = vrot.lane.b32.xlu0 %v2591_v45, %s2711_s6 }
 0xdbe   :  { %v899_v47 = vpop.permute.xlu0 %898 }
 0xdbf   :  { %v901_v50 = vmul.f32 %v899_v47, %v896_v46 }
 0xdc1   :  { %v2915_v51 = vadd.f32 %v902_v49, %v901_v50 }
 0xdc3   :  { %905 = vrot.lane.b32.xlu1 %v2915_v51, %s2711_s6 }
 0xe35   :  { %v906_v53 = vpop.permute.xlu1 %905 }
 0xe36   :  { %2364 = vmatmul.mubr.msk.f32.vlgmr.msra.gmra.mrb[6].mxu0 %vm185_vm5, %v906_v53 }
 0xe37   :  { %2509 = vmatpush3.bf16.msk.msra.mxu0 %vm2782_vm4, %v2790_v37  ;;  %2377 = vmatprep.mubr.msk.f32.mxu0 %vm2707_vm0, %v2708_v1 }
 0xe38   :  { %2514 = vmatprep.subr.bf16.mxu0 %v2706_v0 }
 0xe3a   :  { %2378 = vmatmul.mubr.msk.f32.vlgmr.msra.gmra.mrb[8].mxu0 %vm185_vm5, %v906_v53 }
 0xe3b   :  { %2517 = vmatpush3.bf16.msk.msra.mxu0 %vm2782_vm4, %v2778_v33  ;;  %2391 = vmatprep.mubr.msk.f32.mxu0 %vm2707_vm0, %v2708_v1 }
 0xe3c   :  { %2522 = vmatprep.subr.bf16.mxu0 %v2706_v0 }
 0xf09   :  { %v975_v54 = vpop.f32.mrb[6].mxu0 }
 0xf0a   :  { %v976_v55 = vadd.f32 %v2843_v11, %v975_v54  ;;  %v2365_v56 = vpop.f32.mrb[7].mxu0 }
 0xf0c   :  { %v979_v57 = vsel %vm451_vm6, %v976_v55, -inf }
 0xf0d   :  { %980 = vmax.xlane.f32.xlu0 %v979_v57  ;;  %v1140_v58 = vpop.f32.mrb[8].mxu0 }
 0xf0e   :  { %v2379_v59 = vpop.f32.mrb[9].mxu0  ;;  %v1141_v60 = vadd.f32 %v2812_v48, %v1140_v58 }
 0xf0f   :  { %v1257_v59 = vsub.s32 3, %v2890_v12 }
 0xf23   :  { %1150 = vrot.lane.b32.xlu0 %v1141_v60, %s2713_s7 }
 0xf9a   :  { %v981_v61 = vpop.xlane.xlu0 %980 }
 0xf9b   :  { %v982_v62 = vsub.f32 %v976_v55, %v981_v61  ;;  %v1258_v61 = vrot.slane %v2894_v15, %v1257_v59 }
 0xf9d   :  { %v983_v63 = vmul.f32 1.442695, %v982_v62 }
 0xf9e   :  { %v1151_v26 = vpop.permute.xlu0 %1150 }
 0xf9f   :  { %2592 = vpow2.f32 %v983_v63 }
 0xfa9   :  { %v2593_v2 = vpop.eup %2592 }
 0xfaa   :  { %v985_v4 = vsel %vm451_vm6, %v2593_v2, 0.0 }
 0xfab   :  { %986 = vadd.xlane.f32.xlu1 %v985_v4 }
0x1038   :  { %v987_v5 = vpop.xlane.xlu1 %986 }
0x1039   :  { %2594 = vlog2.f32 %v987_v5 }
0x1043   :  { %v2595_v7 = vpop.eup %2594 }
0x1044   :  { %v989_v9 = vmul.f32 0.6931472, %v2595_v7 }
0x1046   :  { %v990_v10 = vsub.f32 0.0, %v989_v9 }
0x1048   :  { %v995_v13 = vmul.f32 %v994_v8, %v990_v10  ;;  %v997_v14 = vmul.f32 %v2796_v38, %v990_v10 }
0x104a   :  { %v2942_v16 = vadd.f32 %v995_v13, %v2901_v24  ;;  %v998_v17 = vadd.f32 %v2798_v39, %v997_v14 }
0x104c   :  { %v999_v18 = vmul.f32 0.01, %v998_v17 }
0x104e   :  { %v1000_v19 = vmax.f32 %v998_v17, %v999_v18 }
0x1050   :  { %2371 = vmatmul.mubr.msk.f32.vlgmr.msra.gmra.mrb[12].mxu1 %vm185_vm5, %v1000_v19 }
0x1051   :  { %2513 = vmatpush3.bf16.msk.msra.mxu1 %vm2782_vm4, %v2820_v3  ;;  %2384 = vmatprep.mubr.msk.f32.mxu1 %vm2707_vm0, %v2708_v1 }
0x1052   :  { %2518 = vmatprep.subr.bf16.mxu1 %v2706_v0 }
0x1123   :  { %v1070_v20 = vpop.f32.mrb[12].mxu1 }
0x1124   :  { %v1071_v21 = vadd.f32 %v2816_v52, %v1070_v20  ;;  %v2372_v22 = vpop.f32.mrb[13].mxu1 }
0x1126   :  { %v1144_v23 = vadd.f32 %v1141_v60, %v1071_v21 }
0x1128   :  { %v1145_v24 = vmul.f32 0.5, %v1144_v23 }
0x112a   :  { %2596 = vtanh.f32 %v1145_v24 }
0x1134   :  { %v2597_v25 = vpop.eup %2596 }
0x1135   :  { %v1147_v28 = vadd.f32 1.0, %v2597_v25 }
0x1137   :  { %v1148_v29 = vmul.f32 0.5, %v1147_v28 }
0x1139   :  { %v1153_v27 = vmul.f32 %v1151_v26, %v1148_v29  ;;  %v1160_v35 = vsub.f32 1.0, %v1148_v29  ;;  %v1166_v40 = vmul.f32 %v1148_v29, %v2915_v51 }
0x113b   :  { %1155 = vrot.lane.b32.xlu1 %v1153_v27, %s2709_s1 }
0x11ad   :  { %v1156_v30 = vpop.permute.xlu1 %1155 }
0x11ae   :  { %v1158_v31 = vadd.f32 %v1156_v30, %v1071_v21 }
0x11b0   :  { %2598 = vtanh.f32 %v1158_v31 }
0x11ba   :  { %v2599_v32 = vpop.eup %2598 }
0x11bb   :  { %1162 = vrot.lane.b32.xlu0 %v2599_v32, %s2711_s6 }
0x122d   :  { %v1163_v36 = vpop.permute.xlu0 %1162 }
0x122e   :  { %v1165_v41 = vmul.f32 %v1163_v36, %v1160_v35 }
0x1230   :  { %v2956_v42 = vadd.f32 %v1166_v40, %v1165_v41 }
0x1232   :  { %1169 = vrot.lane.b32.xlu1 %v2956_v42, %s2711_s6 }
0x12a4   :  { %v1170_v43 = vpop.permute.xlu1 %1169 }
0x12a5   :  { %2385 = vmatmul.mubr.msk.f32.vlgmr.msra.gmra.mrb[14].mxu1 %vm185_vm5, %v1170_v43 }
0x12a6   :  { %2521 = vmatpush3.bf16.msk.msra.mxu1 %vm2782_vm4, %v2790_v37  ;;  %2398 = vmatprep.mubr.msk.f32.mxu1 %vm2707_vm0, %v2708_v1 }
0x12a7   :  { %2526 = vmatprep.subr.bf16.mxu1 %v2706_v0 }
0x12a9   :  { %2399 = vmatmul.mubr.msk.f32.vlgmr.msra.gmra.mrb[16].mxu1 %vm185_vm5, %v1170_v43 }
0x12aa   :  { %2529 = vmatpush3.bf16.msk.msra.mxu1 %vm2782_vm4, %v2778_v33  ;;  %2412 = vmatprep.mubr.msk.f32.mxu1 %vm2707_vm0, %v2708_v1 }
0x12ab   :  { %2534 = vmatprep.subr.bf16.mxu1 %v2706_v0 }
0x1378   :  { %v1239_v44 = vpop.f32.mrb[14].mxu1 }
0x1379   :  { %v1240_v45 = vadd.f32 %v2843_v11, %v1239_v44  ;;  %v2386_v46 = vpop.f32.mrb[15].mxu1 }
0x137b   :  { %v1243_v47 = vsel %vm451_vm6, %v1240_v45, -inf }
0x137c   :  { %1244 = vmax.xlane.f32.xlu0 %v1243_v47  ;;  %v1404_v49 = vpop.f32.mrb[16].mxu1 }
0x137d   :  { %v2400_v50 = vpop.f32.mrb[17].mxu1  ;;  %v1405_v51 = vadd.f32 %v2812_v48, %v1404_v49  ;;  %v1521_v49 = vsub.s32 4, %v2890_v12 }
0x1392   :  { %1414 = vrot.lane.b32.xlu0 %v1405_v51, %s2713_s7 }
0x1409   :  { %v1245_v53 = vpop.xlane.xlu0 %1244 }
0x140a   :  { %v1246_v54 = vsub.f32 %v1240_v45, %v1245_v53 }
0x140c   :  { %v1247_v55 = vmul.f32 1.442695, %v1246_v54 }
0x140d   :  { %v1415_v20 = vpop.permute.xlu0 %1414 }
0x140e   :  { %2600 = vpow2.f32 %v1247_v55 }
0x1418   :  { %v2601_v56 = vpop.eup %2600 }
0x1419   :  { %v1249_v57 = vsel %vm451_vm6, %v2601_v56, 0.0 }
0x141a   :  { %1250 = vadd.xlane.f32.xlu1 %v1249_v57 }
0x14a7   :  { %v1251_v58 = vpop.xlane.xlu1 %1250 }
0x14a8   :  { %2602 = vlog2.f32 %v1251_v58 }
0x14b2   :  { %v2603_v60 = vpop.eup %2602 }
0x14b3   :  { %v1253_v62 = vmul.f32 0.6931472, %v2603_v60 }
0x14b5   :  { %v1254_v63 = vsub.f32 0.0, %v1253_v62 }
0x14b7   :  { %v1259_v2 = vmul.f32 %v1258_v61, %v1254_v63  ;;  %v1261_v4 = vmul.f32 %v2796_v38, %v1254_v63 }
0x14b9   :  { %v2983_v5 = vadd.f32 %v1259_v2, %v2942_v16  ;;  %v1262_v6 = vadd.f32 %v2798_v39, %v1261_v4 }
0x14bb   :  { %v1263_v7 = vmul.f32 0.01, %v1262_v6 }
0x14bd   :  { %v1264_v8 = vmax.f32 %v1262_v6, %v1263_v7 }
0x14bf   :  { %2392 = vmatmul.mubr.msk.f32.vlgmr.msra.gmra.mrb[10].mxu0 %vm185_vm5, %v1264_v8 }
0x14c0   :  { %2525 = vmatpush3.bf16.msk.msra.mxu0 %vm2782_vm4, %v2820_v3  ;;  %2405 = vmatprep.mubr.msk.f32.mxu0 %vm2707_vm0, %v2708_v1 }
0x14c1   :  { %2530 = vmatprep.subr.bf16.mxu0 %v2706_v0 }
0x1592   :  { %v1334_v9 = vpop.f32.mrb[10].mxu0 }
0x1593   :  { %v1335_v10 = vadd.f32 %v2816_v52, %v1334_v9  ;;  %v2393_v13 = vpop.f32.mrb[11].mxu0 }
0x1595   :  { %v1408_v14 = vadd.f32 %v1405_v51, %v1335_v10  ;;  %v1522_v51 = vrot.slane %v2894_v15, %v1521_v49 }
0x1597   :  { %v1409_v16 = vmul.f32 0.5, %v1408_v14 }
0x1599   :  { %2604 = vtanh.f32 %v1409_v16 }
0x15a3   :  { %v2605_v17 = vpop.eup %2604 }
0x15a4   :  { %v1411_v18 = vadd.f32 1.0, %v2605_v17 }
0x15a6   :  { %v1412_v19 = vmul.f32 0.5, %v1411_v18 }
0x15a8   :  { %v1417_v21 = vmul.f32 %v1415_v20, %v1412_v19  ;;  %v1424_v25 = vsub.f32 1.0, %v1412_v19  ;;  %v1430_v29 = vmul.f32 %v1412_v19, %v2956_v42 }
0x15aa   :  { %1419 = vrot.lane.b32.xlu1 %v1417_v21, %s2709_s1 }
0x161c   :  { %v1420_v22 = vpop.permute.xlu1 %1419 }
0x161d   :  { %v1422_v23 = vadd.f32 %v1420_v22, %v1335_v10 }
0x161f   :  { %2606 = vtanh.f32 %v1422_v23 }
0x1629   :  { %v2607_v24 = vpop.eup %2606 }
0x162a   :  { %1426 = vrot.lane.b32.xlu0 %v2607_v24, %s2711_s6 }
0x169c   :  { %v1427_v28 = vpop.permute.xlu0 %1426 }
0x169d   :  { %v1429_v26 = vmul.f32 %v1427_v28, %v1424_v25 }
0x169f   :  { %v2997_v27 = vadd.f32 %v1430_v29, %v1429_v26 }
0x16a1   :  { %1433 = vrot.lane.b32.xlu1 %v2997_v27, %s2711_s6 }
0x1713   :  { %v1434_v30 = vpop.permute.xlu1 %1433 }
0x1714   :  { %2406 = vmatmul.mubr.msk.f32.vlgmr.msra.gmra.mrb[12].mxu0 %vm185_vm5, %v1434_v30 }
0x1715   :  { %2533 = vmatpush3.bf16.msk.msra.mxu0 %vm2782_vm4, %v2790_v37  ;;  %2419 = vmatprep.mubr.msk.f32.mxu0 %vm2707_vm0, %v2708_v1 }
0x1716   :  { %2538 = vmatprep.subr.bf16.mxu0 %v2706_v0 }
0x1718   :  { %2420 = vmatmul.mubr.msk.f32.vlgmr.msra.gmra.mrb[14].mxu0 %vm185_vm5, %v1434_v30 }
0x1719   :  { %2541 = vmatpush3.bf16.msk.msra.mxu0 %vm2782_vm4, %v2778_v33  ;;  %2433 = vmatprep.mubr.msk.f32.mxu0 %vm2707_vm0, %v2708_v1 }
0x171a   :  { %2546 = vmatprep.subr.bf16.mxu0 %v2706_v0 }
0x17e7   :  { %v1503_v31 = vpop.f32.mrb[12].mxu0 }
0x17e8   :  { %v1504_v32 = vadd.f32 %v2843_v11, %v1503_v31  ;;  %v2407_v35 = vpop.f32.mrb[13].mxu0 }
0x17e9   :  { %v1785_v35 = vsub.s32 5, %v2890_v12 }
0x17ea   :  { %v1507_v36 = vsel %vm451_vm6, %v1504_v32, -inf }
0x17eb   :  { %1508 = vmax.xlane.f32.xlu0 %v1507_v36  ;;  %v1668_v40 = vpop.f32.mrb[14].mxu0 }
0x17ec   :  { %v2421_v41 = vpop.f32.mrb[15].mxu0  ;;  %v1669_v42 = vadd.f32 %v2812_v48, %v1668_v40  ;;  %v1786_v40 = vrot.slane %v2894_v15, %v1785_v35 }
0x1801   :  { %1678 = vrot.lane.b32.xlu0 %v1669_v42, %s2713_s7 }
0x1878   :  { %v1509_v43 = vpop.xlane.xlu0 %1508 }
0x1879   :  { %v1510_v33 = vsub.f32 %v1504_v32, %v1509_v43 }
0x187b   :  { %v1511_v44 = vmul.f32 1.442695, %v1510_v33 }
0x187c   :  { %v1679_v8 = vpop.permute.xlu0 %1678 }
0x187d   :  { %2608 = vpow2.f32 %v1511_v44 }
0x1887   :  { %v2609_v45 = vpop.eup %2608 }
0x1888   :  { %v1513_v46 = vsel %vm451_vm6, %v2609_v45, 0.0 }
0x1889   :  { %1514 = vadd.xlane.f32.xlu1 %v1513_v46 }
0x1916   :  { %v1515_v47 = vpop.xlane.xlu1 %1514 }
0x1917   :  { %2610 = vlog2.f32 %v1515_v47 }
0x1921   :  { %v2611_v50 = vpop.eup %2610 }
0x1922   :  { %v1517_v53 = vmul.f32 0.6931472, %v2611_v50 }
0x1924   :  { %v1518_v54 = vsub.f32 0.0, %v1517_v53 }
0x1926   :  { %v1523_v55 = vmul.f32 %v1522_v51, %v1518_v54  ;;  %v1525_v56 = vmul.f32 %v2796_v38, %v1518_v54 }
0x1928   :  { %v3024_v57 = vadd.f32 %v1523_v55, %v2983_v5  ;;  %v1526_v58 = vadd.f32 %v2798_v39, %v1525_v56 }
0x192a   :  { %v1527_v59 = vmul.f32 0.01, %v1526_v58 }
0x192c   :  { %v1528_v60 = vmax.f32 %v1526_v58, %v1527_v59 }
0x192e   :  { %2413 = vmatmul.mubr.msk.f32.vlgmr.msra.gmra.mrb[18].mxu1 %vm185_vm5, %v1528_v60 }
0x192f   :  { %2537 = vmatpush3.bf16.msk.msra.mxu1 %vm2782_vm4, %v2820_v3  ;;  %2426 = vmatprep.mubr.msk.f32.mxu1 %vm2707_vm0, %v2708_v1 }
0x1930   :  { %2542 = vmatprep.subr.bf16.mxu1 %v2706_v0 }
0x1a01   :  { %v1598_v61 = vpop.f32.mrb[18].mxu1 }
0x1a02   :  { %v1599_v62 = vadd.f32 %v2816_v52, %v1598_v61  ;;  %v2414_v63 = vpop.f32.mrb[19].mxu1 }
0x1a04   :  { %v1672_v2 = vadd.f32 %v1669_v42, %v1599_v62 }
0x1a06   :  { %v1673_v4 = vmul.f32 0.5, %v1672_v2 }
0x1a08   :  { %2612 = vtanh.f32 %v1673_v4 }
0x1a12   :  { %v2613_v5 = vpop.eup %2612 }
0x1a13   :  { %v1675_v6 = vadd.f32 1.0, %v2613_v5 }
0x1a15   :  { %v1676_v7 = vmul.f32 0.5, %v1675_v6 }
0x1a17   :  { %v1681_v9 = vmul.f32 %v1679_v8, %v1676_v7  ;;  %v1688_v16 = vsub.f32 1.0, %v1676_v7  ;;  %v1694_v18 = vmul.f32 %v1676_v7, %v2997_v27 }
0x1a19   :  { %1683 = vrot.lane.b32.xlu1 %v1681_v9, %s2709_s1 }
0x1a8b   :  { %v1684_v10 = vpop.permute.xlu1 %1683 }
0x1a8c   :  { %v1686_v13 = vadd.f32 %v1684_v10, %v1599_v62  ;;  %v52_v10 = vld [vmem:[#allocation5 + $0x70] sm:$0xff] }
0x1a8e   :  { %2614 = vtanh.f32 %v1686_v13  ;;  %v53_v13 = vld [vmem:[#allocation5 + $0x78] sm:$0xff] }
0x1a98   :  { %v2615_v14 = vpop.eup %2614 }
0x1a99   :  { %1690 = vrot.lane.b32.xlu0 %v2615_v14, %s2711_s6  ;;  %v2551_v14 = vpack.c.bf16 %v53_v13, %v52_v10 }
0x1b0b   :  { %v1691_v17 = vpop.permute.xlu0 %1690 }
0x1b0c   :  { %v1693_v19 = vmul.f32 %v1691_v17, %v1688_v16 }
0x1b0e   :  { %v1695_v20 = vadd.f32 %v1694_v18, %v1693_v19 }
0x1b10   :  { %1697 = vrot.lane.b32.xlu1 %v1695_v20, %s2711_s6 }
0x1b82   :  { %v1698_v21 = vpop.permute.xlu1 %1697 }
0x1b83   :  { %2427 = vmatmul.mubr.msk.f32.vlgmr.msra.gmra.mrb[20].mxu1 %vm185_vm5, %v1698_v21 }
0x1b84   :  { %2545 = vmatpush3.bf16.msk.msra.mxu1 %vm2782_vm4, %v2790_v37  ;;  %2440 = vmatprep.mubr.msk.f32.mxu1 %vm2707_vm0, %v2708_v1 }
0x1b85   :  { %2550 = vmatprep.subr.bf16.mxu1 %v2706_v0 }
0x1b87   :  { %2441 = vmatmul.mubr.msk.f32.vlgmr.msra.gmra.mrb[22].mxu1 %vm185_vm5, %v1698_v21 }
0x1b88   :  { %2454 = vmatprep.mubr.msk.f32.mxu1 %vm2707_vm0, %v2708_v1  ;;  %2552 = vmatpush3.bf16.msra.mxu1 %v2551_v14 }
0x1c56   :  { %v1767_v22 = vpop.f32.mrb[20].mxu1 }
0x1c57   :  { %v1768_v23 = vadd.f32 %v2843_v11, %v1767_v22  ;;  %v2428_v24 = vpop.f32.mrb[21].mxu1  ;;  %v2209_v22 = vld [vmem:[#allocation5 + $0x87] ss:$0 sm:$0xff] }
0x1c59   :  { %v1771_v25 = vsel %vm451_vm6, %v1768_v23, -inf }
0x1c5a   :  { %1772 = vmax.xlane.f32.xlu0 %v1771_v25  ;;  %v1932_v28 = vpop.f32.mrb[22].mxu1 }
0x1c5b   :  { %v2442_v29 = vpop.f32.mrb[23].mxu1  ;;  %v1933_v37 = vadd.f32 %v2812_v48, %v1932_v28 }
0x1c5c   :  { %v2210_v29 = vld [vmem:[#allocation5 + $0x88] ss:$0 sm:$0xff] }
0x1c70   :  { %1942 = vrot.lane.b32.xlu0 %v1933_v37, %s2713_s7 }
0x1ce7   :  { %v1773_v26 = vpop.xlane.xlu0 %1772 }
0x1ce8   :  { %v1774_v0 = vsub.f32 %v1768_v23, %v1773_v26 }
0x1cea   :  { %v1775_v27 = vmul.f32 1.442695, %v1774_v0 }
0x1ceb   :  { %v1943_v55 = vpop.permute.xlu0 %1942 }
0x1cec   :  { %2616 = vpow2.f32 %v1775_v27 }
0x1cf6   :  { %v2617_v30 = vpop.eup %2616 }
0x1cf7   :  { %v1777_v31 = vsel %vm451_vm6, %v2617_v30, 0.0 }
0x1cf8   :  { %1778 = vadd.xlane.f32.xlu1 %v1777_v31 }
0x1d85   :  { %v1779_v32 = vpop.xlane.xlu1 %1778 }
0x1d86   :  { %2618 = vlog2.f32 %v1779_v32 }
0x1d90   :  { %v2619_v36 = vpop.eup %2618 }
0x1d91   :  { %v1781_v41 = vmul.f32 0.6931472, %v2619_v36 }
0x1d93   :  { %v1782_v42 = vsub.f32 0.0, %v1781_v41 }
0x1d95   :  { %v1787_v48 = vmul.f32 %v1786_v40, %v1782_v42  ;;  %v1789_v43 = vmul.f32 %v2796_v38, %v1782_v42 }
0x1d97   :  { %v1788_v33 = vadd.f32 %v1787_v48, %v3024_v57  ;;  %v1790_v44 = vadd.f32 %v2798_v39, %v1789_v43 }
0x1d99   :  { %v1791_v45 = vmul.f32 0.01, %v1790_v44 }
0x1d9b   :  { %v1792_v46 = vmax.f32 %v1790_v44, %v1791_v45 }
0x1d9d   :  { %2434 = vmatmul.mubr.msk.f32.vlgmr.msra.gmra.mrb[16].mxu0 %vm185_vm5, %v1792_v46 }
0x1d9e   :  { %2549 = vmatpush3.bf16.msk.msra.mxu0 %vm2782_vm4, %v2820_v3  ;;  %2447 = vmatprep.mubr.msk.f32.mxu0 %vm2707_vm0, %v2708_v1 }
0x1e70   :  { %v1862_v47 = vpop.f32.mrb[16].mxu0 }
0x1e71   :  { %v1863_v49 = vadd.f32 %v2816_v52, %v1862_v47  ;;  %v2435_v50 = vpop.f32.mrb[17].mxu0 }
0x1e73   :  { %v1936_v38 = vadd.f32 %v1933_v37, %v1863_v49 }
0x1e75   :  { %v1937_v51 = vmul.f32 0.5, %v1936_v38 }
0x1e77   :  { %2620 = vtanh.f32 %v1937_v51 }
0x1e81   :  { %v2621_v53 = vpop.eup %2620 }
0x1e82   :  { %v1939_v39 = vadd.f32 1.0, %v2621_v53 }
0x1e84   :  { %v1940_v54 = vmul.f32 0.5, %v1939_v39 }
0x1e86   :  { %v1945_v56 = vmul.f32 %v1943_v55, %v1940_v54  ;;  %v1952_v1 = vsub.f32 1.0, %v1940_v54  ;;  %v1958_v52 = vmul.f32 %v1940_v54, %v1695_v20 }
0x1e88   :  { %1947 = vrot.lane.b32.xlu1 %v1945_v56, %s2709_s1 }
0x1efa   :  { %v1948_v57 = vpop.permute.xlu1 %1947 }
0x1efb   :  { %v1950_v34 = vadd.f32 %v1948_v57, %v1863_v49 }
0x1efd   :  { %2622 = vtanh.f32 %v1950_v34 }
0x1f07   :  { %v2623_v3 = vpop.eup %2622 }
0x1f08   :  { %1954 = vrot.lane.b32.xlu0 %v2623_v3, %s2711_s6 }
0x1f7a   :  { %v1955_v58 = vpop.permute.xlu0 %1954 }
0x1f7b   :  { %v1957_v59 = vmul.f32 %v1955_v58, %v1952_v1 }
0x1f7d   :  { %v1959_v60 = vadd.f32 %v1958_v52, %v1957_v59 }
0x1f7f   :  { %1961 = vrot.lane.b32.xlu1 %v1959_v60, %s2711_s6 }
0x1ff1   :  { %v1962_v61 = vpop.permute.xlu1 %1961 }
0x1ff2   :  { %2448 = vmatmul.mubr.msk.f32.vlgmr.msra.gmra.mrb[18].mxu0 %vm185_vm5, %v1962_v61 }
0x20c5   :  { %v2031_v62 = vpop.f32.mrb[18].mxu0 }
0x20c6   :  { %v2032_v63 = vadd.f32 %v2843_v11, %v2031_v62  ;;  %v2449_v2 = vpop.f32.mrb[19].mxu0  ;;  %v2049_v11 = vsub.s32 6, %v2890_v12 }
0x20c8   :  { %v2035_v4 = vsel %vm451_vm6, %v2032_v63, -inf  ;;  %v2050_v18 = vrot.slane %v2894_v15, %v2049_v11 }
0x20c9   :  { %2036 = vmax.xlane.f32.xlu0 %v2035_v4 }
0x2156   :  { %v2037_v5 = vpop.xlane.xlu0 %2036 }
0x2157   :  { %v2038_v6 = vsub.f32 %v2032_v63, %v2037_v5 }
0x2159   :  { %v2039_v7 = vmul.f32 1.442695, %v2038_v6 }
0x215b   :  { %2624 = vpow2.f32 %v2039_v7 }
0x2165   :  { %v2625_v8 = vpop.eup %2624 }
0x2166   :  { %v2041_v9 = vsel %vm451_vm6, %v2625_v8, 0.0 }
0x2167   :  { %2042 = vadd.xlane.f32.xlu1 %v2041_v9 }
0x21f4   :  { %v2043_v16 = vpop.xlane.xlu1 %2042 }
0x21f5   :  { %2626 = vlog2.f32 %v2043_v16 }
0x21ff   :  { %v2627_v17 = vpop.eup %2626 }
0x2200   :  { %v2045_v19 = vmul.f32 0.6931472, %v2627_v17 }
0x2202   :  { %v2046_v20 = vsub.f32 0.0, %v2045_v19 }
0x2204   :  { %v2051_v21 = vmul.f32 %v2050_v18, %v2046_v20 }
0x2206   :  { %v2052_v23 = vadd.f32 %v2051_v21, %v1788_v33 }
0x2208   :  { %v2057_v24 = vadd.f32 %v2209_v22, %v2052_v23 }
0x220a   :  { %v2058_v25 = vmul.f32 0.01, %v2057_v24 }
0x220c   :  { %v2059_v28 = vmax.f32 %v2057_v24, %v2058_v25 }
0x220e   :  { %2455 = vmatmul.mubr.msk.f32.vlgmr.msra.gmra.mrb[24].mxu1 %vm2064_vm7, %v2059_v28 }
0x22e1   :  { %v2134_v37 = vpop.f32.mrb[24].mxu1 }
0x22e2   :  { %v2135_v26 = vadd.f32 %v2210_v29, %v2134_v37  ;;  %v2456_v0 = vpop.f32.mrb[25].mxu1 }
0x22e4   :  { %v2138_v27 = vmul.f32 0.5, %v2135_v26 }
0x22e6   :  { %2628 = vtanh.f32 %v2138_v27 }
0x22f0   :  { %v2629_v12 = vpop.eup %2628 }
0x22f1   :  { %v2140_v15 = vadd.f32 1.0, %v2629_v12 }
0x22f3   :  { %v2141_v30 = vmul.f32 0.5, %v2140_v15 }
0x22f5   :  { %2142 = vst [vmem:[#allocation7] sm:$0xff] %v2141_v30 }
0x22f6   :  { %2685 = shalt.err (!%p2682_p6)
}
0x22f7   :  { %s2686_s13 = scalar_lea.hbm %s3089_s2, 128 }
0x22f8   :  { %p2687_p7 = scmp.ne.s32.totalorder %s3089_s2, %s2686_s13  ;;  %p2690_p8 = scmp.lt.u32.totalorder %s2686_s13, %s3089_s2 }
0x22fa   :  { %p2692_p9 = pnand %p2690_p8, %p2687_p7 }
0x22fc   :  { %2695 = shalt.err (!%p2692_p9)
}
0x22fd   :  { %2152 = dma.vmem_to_hbm [thread:$0]  %s2150_s9, 128, %s3089_s2, [#allocation4]  }
0x22fe   :  { %2700 = dma.done.wait [#allocation4], 128  }
0x22ff   :  { %2701 = vsyncadd [#allocation4], 4294967168 }
0x2300   :  { %2156 = vsyncpa [#allocation3], 1 }
0x2301   :  { %2157 = vsyncpa [#allocation6], 1 }
0x2302   :  { %2158 = vsyncpa [#allocation4], 1 }

</bundles_post_ra>
